<compile_context>
chip_gen: v7x
topology: tpu7x:2x2x1
jax: 0.10.0
libtpu: 0.0.40
codegen_flags: <defaults>
</compile_context>

<pallas_src>
import functools

import jax
import jax.numpy as jnp
from jax.experimental import pallas as pl
from jax.experimental.pallas import tpu as pltpu

LEAKY_SLOPE = 0.01  # F.leaky_relu default negative_slope


# ----------------------------------------------------------------------------
# Pallas kernel: pad + conv3x3 (no bias) + LeakyReLU + channel concat, one batch elem
# ----------------------------------------------------------------------------
def _make_dense_lrelu_kernel(x_ref, w_ref, o_ref, pad_ref, col_ref, *, H, W, Cin, G, slope):
    """x_ref:   (1, H, W, Cin)        unpadded NHWC input tile
       w_ref:   (9*Cin, G)            conv weight, row (kh*3+kw)*Cin + c == w_hwio[kh, kw, c, g]
       o_ref:   (1, H, W, Cin+G)      fused concat output
       pad_ref: VMEM (H+2, W+2, Cin)  zero-padded input (padding fused into the kernel)
       col_ref: VMEM (H, W, 9*Cin)    im2col buffer
    """
    # Zero-pad inside the kernel (no wrapper-side jnp.pad / extra HBM pass).
    pad_ref[...] = jnp.zeros_like(pad_ref)
    pad_ref[1:H + 1, 1:W + 1, :] = x_ref[0]

    # im2col: one static window copy per tap (no per-tap reshape or matmul).
    for kh in range(3):
        for kw in range(3):
            tap = kh * 3 + kw
            col_ref[:, :, tap * Cin:(tap + 1) * Cin] = pad_ref[kh:kh + H, kw:kw + W, :]

    # Single MXU matmul with K = 9*Cin, f32 accumulation.
    col = col_ref[...].reshape(H * W, 9 * Cin)
    acc = jnp.dot(col, w_ref[...], preferred_element_type=jnp.float32)  # (H*W, G)

    # LeakyReLU (negative_slope = 0.01, matching F.leaky_relu default).
    act = jnp.where(acc >= 0, acc, slope * acc)

    # Fused channel concat: first Cin channels pass x through, last G are the conv output.
    o_ref[0, :, :, :Cin] = x_ref[0]
    o_ref[0, :, :, Cin:] = act.reshape(H, W, G).astype(o_ref.dtype)


# ----------------------------------------------------------------------------
# Wrappers
# ----------------------------------------------------------------------------
def make_dense_lrelu_nhwc(x_nhwc, w_hwio, *, slope=LEAKY_SLOPE):
    """x_nhwc: (N, H, W, Cin), w_hwio: (3, 3, Cin, G) -> (N, H, W, Cin+G)."""
    N, H, W, Cin = x_nhwc.shape
    G = w_hwio.shape[-1]
    w_mat = w_hwio.reshape(9 * Cin, G)

    kernel = functools.partial(_make_dense_lrelu_kernel,
                               H=H, W=W, Cin=Cin, G=G, slope=slope)

    itemsize = jnp.dtype(x_nhwc.dtype).itemsize
    cost = pl.CostEstimate(
        flops=2 * N * H * W * 9 * Cin * G,
        transcendentals=0,
        bytes_accessed=(x_nhwc.size + w_mat.size + N * H * W * (Cin + G)) * itemsize,
    )

    return pl.pallas_call(
        kernel,
        out_shape=jax.ShapeDtypeStruct((N, H, W, Cin + G), x_nhwc.dtype),
        grid=(N,),
        in_specs=[
            pl.BlockSpec((1, H, W, Cin), lambda n: (n, 0, 0, 0)),
            pl.BlockSpec((9 * Cin, G), lambda n: (0, 0)),
        ],
        out_specs=pl.BlockSpec((1, H, W, Cin + G), lambda n: (n, 0, 0, 0)),
        scratch_shapes=[
            pltpu.VMEM((H + 2, W + 2, Cin), x_nhwc.dtype),
            pltpu.VMEM((H, W, 9 * Cin), x_nhwc.dtype),
        ],
        compiler_params=pltpu.CompilerParams(dimension_semantics=("parallel",)),
        cost_estimate=cost,
    )(x_nhwc, w_mat)


def make_dense_lrelu_nchw(x_nchw, w_oihw, *, slope=LEAKY_SLOPE):
    """Matches PyTorch: x (N, Cin, H, W), weight (G, Cin, 3, 3) -> (N, Cin+G, H, W)."""
    x = jnp.transpose(x_nchw, (0, 2, 3, 1))   # NCHW -> NHWC
    w = jnp.transpose(w_oihw, (2, 3, 1, 0))   # OIHW -> HWIO
    y = make_dense_lrelu_nhwc(x, w, slope=slope)
    return jnp.transpose(y, (0, 3, 1, 2))     # NHWC -> NCHW


# ----------------------------------------------------------------------------
# Pure-JAX reference (for correctness check)
# ----------------------------------------------------------------------------
def make_dense_lrelu_reference_nchw(x_nchw, w_oihw, *, slope=LEAKY_SLOPE):
    dn = jax.lax.conv_dimension_numbers(x_nchw.shape, w_oihw.shape,
                                        ("NCHW", "OIHW", "NCHW"))
    conv = jax.lax.conv_general_dilated(x_nchw, w_oihw, (1, 1), "SAME",
                                        dimension_numbers=dn)
    act = jnp.where(conv >= 0, conv, slope * conv)
    return jnp.concatenate([x_nchw, act], axis=1)


# ----------------------------------------------------------------------------
if __name__ == "__main__":
    nChannels, growthRate = 8, 8
    N, H, W = 2, 16, 16

    key = jax.random.PRNGKey(0)
    kx, kw = jax.random.split(key)
    x = jax.random.normal(kx, (N, nChannels, H, W), jnp.float32)        # NCHW like PyTorch
    fan_in = nChannels * 3 * 3
    w = jax.random.normal(kw, (growthRate, nChannels, 3, 3), jnp.float32) \
        * (2.0 / fan_in) ** 0.5                                          # OIHW like PyTorch

    y = jax.block_until_ready(make_dense_lrelu_nchw(x, w))
    y_ref = jax.block_until_ready(make_dense_lrelu_reference_nchw(x, w))

    assert y.shape == (N, nChannels + growthRate, H, W)
    assert jnp.allclose(y, y_ref, atol=1e-4, rtol=1e-4), "mismatch vs reference"

    print("KERNEL_OK")
</pallas_src>

<mosaic_0001>
module attributes {stable_mosaic.version = 11 : i64} {
  func.func @_make_dense_lrelu_kernel(%arg0: i32, %arg1: memref<1x16x16x8xf32, #tpu.memory_space<vmem>>, %arg2: memref<72x8xf32, #tpu.memory_space<vmem>>, %arg3: memref<1x16x16x16xf32, #tpu.memory_space<vmem>>, %arg4: memref<18x18x8xf32, #tpu.memory_space<vmem>>, %arg5: memref<16x16x72xf32, #tpu.memory_space<vmem>>) attributes {dimension_semantics = [#tpu.dimension_semantics<parallel>], iteration_bounds = array<i64: 2>, scalar_prefetch = 0 : i64, scratch_operands = 2 : i64, tpu.core_type = #tpu.core_type<tc>, window_params = [{transform_indices = @transform_0, window_bounds = array<i64: 1, 16, 16, 8>}, {pipeline_mode = #tpu.pipeline_mode<synchronous>, transform_indices = @transform_1, window_bounds = array<i64: 72, 8>}, {transform_indices = @transform_2, window_bounds = array<i64: 1, 16, 16, 16>}]} {
    %cst = arith.constant 0.000000e+00 : f32
    %0 = vector.broadcast %cst : f32 to vector<18x18x8xf32>
    %c0 = arith.constant 0 : index
    %c0_0 = arith.constant 0 : index
    %c0_1 = arith.constant 0 : index
    %1 = vector.load %arg4[%c0, %c0_0, %c0_1] : memref<18x18x8xf32, #tpu.memory_space<vmem>>, vector<18x18x8xf32>
    tpu.vector_store %arg4[%c0, %c0_0, %c0_1], %0 {strides = array<i32>} : memref<18x18x8xf32, #tpu.memory_space<vmem>>, vector<18x18x8xf32>,
    %c0_2 = arith.constant 0 : index
    %c0_3 = arith.constant 0 : index
    %c0_4 = arith.constant 0 : index
    %c0_5 = arith.constant 0 : index
    %2 = vector.load %arg1[%c0_2, %c0_3, %c0_4, %c0_5] : memref<1x16x16x8xf32, #tpu.memory_space<vmem>>, vector<1x16x16x8xf32>
    %3 = vector.shape_cast %2 : vector<1x16x16x8xf32> to vector<16x16x8xf32>
    %c1 = arith.constant 1 : index
    %c1_6 = arith.constant 1 : index
    %c0_7 = arith.constant 0 : index
    %4 = vector.load %arg4[%c1, %c1_6, %c0_7] : memref<18x18x8xf32, #tpu.memory_space<vmem>>, vector<16x16x8xf32>
    tpu.vector_store %arg4[%c1, %c1_6, %c0_7], %3 {strides = array<i32>} : memref<18x18x8xf32, #tpu.memory_space<vmem>>, vector<16x16x8xf32>,
    %c0_8 = arith.constant 0 : index
    %c0_9 = arith.constant 0 : index
    %c0_10 = arith.constant 0 : index
    %5 = vector.load %arg4[%c0_8, %c0_9, %c0_10] : memref<18x18x8xf32, #tpu.memory_space<vmem>>, vector<16x16x8xf32>
    %c0_11 = arith.constant 0 : index
    %c0_12 = arith.constant 0 : index
    %c0_13 = arith.constant 0 : index
    %6 = vector.load %arg5[%c0_11, %c0_12, %c0_13] : memref<16x16x72xf32, #tpu.memory_space<vmem>>, vector<16x16x8xf32>
    tpu.vector_store %arg5[%c0_11, %c0_12, %c0_13], %5 {strides = array<i32>} : memref<16x16x72xf32, #tpu.memory_space<vmem>>, vector<16x16x8xf32>,
    %c0_14 = arith.constant 0 : index
    %c1_15 = arith.constant 1 : index
    %c0_16 = arith.constant 0 : index
    %7 = vector.load %arg4[%c0_14, %c1_15, %c0_16] : memref<18x18x8xf32, #tpu.memory_space<vmem>>, vector<16x16x8xf32>
    %c0_17 = arith.constant 0 : index
    %c0_18 = arith.constant 0 : index
    %c8 = arith.constant 8 : index
    %8 = vector.load %arg5[%c0_17, %c0_18, %c8] : memref<16x16x72xf32, #tpu.memory_space<vmem>>, vector<16x16x8xf32>
    tpu.vector_store %arg5[%c0_17, %c0_18, %c8], %7 {strides = array<i32>} : memref<16x16x72xf32, #tpu.memory_space<vmem>>, vector<16x16x8xf32>,
    %c0_19 = arith.constant 0 : index
    %c2 = arith.constant 2 : index
    %c0_20 = arith.constant 0 : index
    %9 = vector.load %arg4[%c0_19, %c2, %c0_20] : memref<18x18x8xf32, #tpu.memory_space<vmem>>, vector<16x16x8xf32>
    %c0_21 = arith.constant 0 : index
    %c0_22 = arith.constant 0 : index
    %c16 = arith.constant 16 : index
    %10 = vector.load %arg5[%c0_21, %c0_22, %c16] : memref<16x16x72xf32, #tpu.memory_space<vmem>>, vector<16x16x8xf32>
    tpu.vector_store %arg5[%c0_21, %c0_22, %c16], %9 {strides = array<i32>} : memref<16x16x72xf32, #tpu.memory_space<vmem>>, vector<16x16x8xf32>,
    %c1_23 = arith.constant 1 : index
    %c0_24 = arith.constant 0 : index
    %c0_25 = arith.constant 0 : index
    %11 = vector.load %arg4[%c1_23, %c0_24, %c0_25] : memref<18x18x8xf32, #tpu.memory_space<vmem>>, vector<16x16x8xf32>
    %c0_26 = arith.constant 0 : index
    %c0_27 = arith.constant 0 : index
    %c24 = arith.constant 24 : index
    %12 = vector.load %arg5[%c0_26, %c0_27, %c24] : memref<16x16x72xf32, #tpu.memory_space<vmem>>, vector<16x16x8xf32>
    tpu.vector_store %arg5[%c0_26, %c0_27, %c24], %11 {strides = array<i32>} : memref<16x16x72xf32, #tpu.memory_space<vmem>>, vector<16x16x8xf32>,
    %c1_28 = arith.constant 1 : index
    %c1_29 = arith.constant 1 : index
    %c0_30 = arith.constant 0 : index
    %13 = vector.load %arg4[%c1_28, %c1_29, %c0_30] : memref<18x18x8xf32, #tpu.memory_space<vmem>>, vector<16x16x8xf32>
    %c0_31 = arith.constant 0 : index
    %c0_32 = arith.constant 0 : index
    %c32 = arith.constant 32 : index
    %14 = vector.load %arg5[%c0_31, %c0_32, %c32] : memref<16x16x72xf32, #tpu.memory_space<vmem>>, vector<16x16x8xf32>
    tpu.vector_store %arg5[%c0_31, %c0_32, %c32], %13 {strides = array<i32>} : memref<16x16x72xf32, #tpu.memory_space<vmem>>, vector<16x16x8xf32>,
    %c1_33 = arith.constant 1 : index
    %c2_34 = arith.constant 2 : index
    %c0_35 = arith.constant 0 : index
    %15 = vector.load %arg4[%c1_33, %c2_34, %c0_35] : memref<18x18x8xf32, #tpu.memory_space<vmem>>, vector<16x16x8xf32>
    %c0_36 = arith.constant 0 : index
    %c0_37 = arith.constant 0 : index
    %c40 = arith.constant 40 : index
    %16 = vector.load %arg5[%c0_36, %c0_37, %c40] : memref<16x16x72xf32, #tpu.memory_space<vmem>>, vector<16x16x8xf32>
    tpu.vector_store %arg5[%c0_36, %c0_37, %c40], %15 {strides = array<i32>} : memref<16x16x72xf32, #tpu.memory_space<vmem>>, vector<16x16x8xf32>,
    %c2_38 = arith.constant 2 : index
    %c0_39 = arith.constant 0 : index
    %c0_40 = arith.constant 0 : index
    %17 = vector.load %arg4[%c2_38, %c0_39, %c0_40] : memref<18x18x8xf32, #tpu.memory_space<vmem>>, vector<16x16x8xf32>
    %c0_41 = arith.constant 0 : index
    %c0_42 = arith.constant 0 : index
    %c48 = arith.constant 48 : index
    %18 = vector.load %arg5[%c0_41, %c0_42, %c48] : memref<16x16x72xf32, #tpu.memory_space<vmem>>, vector<16x16x8xf32>
    tpu.vector_store %arg5[%c0_41, %c0_42, %c48], %17 {strides = array<i32>} : memref<16x16x72xf32, #tpu.memory_space<vmem>>, vector<16x16x8xf32>,
    %c2_43 = arith.constant 2 : index
    %c1_44 = arith.constant 1 : index
    %c0_45 = arith.constant 0 : index
    %19 = vector.load %arg4[%c2_43, %c1_44, %c0_45] : memref<18x18x8xf32, #tpu.memory_space<vmem>>, vector<16x16x8xf32>
    %c0_46 = arith.constant 0 : index
    %c0_47 = arith.constant 0 : index
    %c56 = arith.constant 56 : index
    %20 = vector.load %arg5[%c0_46, %c0_47, %c56] : memref<16x16x72xf32, #tpu.memory_space<vmem>>, vector<16x16x8xf32>
    tpu.vector_store %arg5[%c0_46, %c0_47, %c56], %19 {strides = array<i32>} : memref<16x16x72xf32, #tpu.memory_space<vmem>>, vector<16x16x8xf32>,
    %c2_48 = arith.constant 2 : index
    %c2_49 = arith.constant 2 : index
    %c0_50 = arith.constant 0 : index
    %21 = vector.load %arg4[%c2_48, %c2_49, %c0_50] : memref<18x18x8xf32, #tpu.memory_space<vmem>>, vector<16x16x8xf32>
    %c0_51 = arith.constant 0 : index
    %c0_52 = arith.constant 0 : index
    %c64 = arith.constant 64 : index
    %22 = vector.load %arg5[%c0_51, %c0_52, %c64] : memref<16x16x72xf32, #tpu.memory_space<vmem>>, vector<16x16x8xf32>
    tpu.vector_store %arg5[%c0_51, %c0_52, %c64], %21 {strides = array<i32>} : memref<16x16x72xf32, #tpu.memory_space<vmem>>, vector<16x16x8xf32>,
    %c0_53 = arith.constant 0 : index
    %c0_54 = arith.constant 0 : index
    %c0_55 = arith.constant 0 : index
    %23 = vector.load %arg5[%c0_53, %c0_54, %c0_55] : memref<16x16x72xf32, #tpu.memory_space<vmem>>, vector<16x16x72xf32>
    %24 = vector.shape_cast %23 : vector<16x16x72xf32> to vector<256x72xf32>
    %c0_56 = arith.constant 0 : index
    %c0_57 = arith.constant 0 : index
    %25 = vector.load %arg2[%c0_56, %c0_57] : memref<72x8xf32, #tpu.memory_space<vmem>>, vector<72x8xf32>
    %cst_58 = arith.constant dense<0.000000e+00> : vector<256x8xf32>
    %26 = tpu.matmul %24, %25, %cst_58 {dimension_numbers = #tpu.dot_dimension_numbers<[1], [0], [0], [1], [0, 0, 1, 1], [], []>} : vector<256x72xf32>, vector<72x8xf32>, vector<256x8xf32> -> vector<256x8xf32>
    %cst_59 = arith.constant 0.000000e+00 : f32
    %27 = vector.broadcast %cst_59 : f32 to vector<256x8xf32>
    %28 = arith.cmpf oge, %26, %27 : vector<256x8xf32>
    %cst_60 = arith.constant 0.00999999977 : f32
    %29 = vector.broadcast %cst_60 : f32 to vector<256x8xf32>
    %30 = arith.mulf %29, %26 : vector<256x8xf32>
    %31 = arith.select %28, %26, %30 : vector<256x8xi1>, vector<256x8xf32>
    %c0_61 = arith.constant 0 : index
    %c0_62 = arith.constant 0 : index
    %c0_63 = arith.constant 0 : index
    %c0_64 = arith.constant 0 : index
    %32 = vector.load %arg1[%c0_61, %c0_62, %c0_63, %c0_64] : memref<1x16x16x8xf32, #tpu.memory_space<vmem>>, vector<1x16x16x8xf32>
    %33 = vector.shape_cast %32 : vector<1x16x16x8xf32> to vector<16x16x8xf32>
    %c0_65 = arith.constant 0 : index
    %c0_66 = arith.constant 0 : index
    %c0_67 = arith.constant 0 : index
    %c0_68 = arith.constant 0 : index
    %34 = vector.load %arg3[%c0_65, %c0_66, %c0_67, %c0_68] : memref<1x16x16x16xf32, #tpu.memory_space<vmem>>, vector<1x16x16x8xf32>
    %35 = vector.shape_cast %34 : vector<1x16x16x8xf32> to vector<16x16x8xf32>
    %36 = vector.shape_cast %33 : vector<16x16x8xf32> to vector<1x16x16x8xf32>
    tpu.vector_store %arg3[%c0_65, %c0_66, %c0_67, %c0_68], %36 {strides = array<i32>} : memref<1x16x16x16xf32, #tpu.memory_space<vmem>>, vector<1x16x16x8xf32>,
    %37 = vector.shape_cast %31 : vector<256x8xf32> to vector<16x16x8xf32>
    %c0_69 = arith.constant 0 : index
    %c0_70 = arith.constant 0 : index
    %c0_71 = arith.constant 0 : index
    %c8_72 = arith.constant 8 : index
    %38 = vector.load %arg3[%c0_69, %c0_70, %c0_71, %c8_72] : memref<1x16x16x16xf32, #tpu.memory_space<vmem>>, vector<1x16x16x8xf32>
    %39 = vector.shape_cast %38 : vector<1x16x16x8xf32> to vector<16x16x8xf32>
    %40 = vector.shape_cast %37 : vector<16x16x8xf32> to vector<1x16x16x8xf32>
    tpu.vector_store %arg3[%c0_69, %c0_70, %c0_71, %c8_72], %40 {strides = array<i32>} : memref<1x16x16x16xf32, #tpu.memory_space<vmem>>, vector<1x16x16x8xf32>,
    return
  }
  func.func @transform_0(%arg0: i32) -> (i32, i32, i32, i32) {
    %c0_i32 = arith.constant 0 : i32
    %c0_i32_0 = arith.constant 0 : i32
    %c0_i32_1 = arith.constant 0 : i32
    %c0_i32_2 = arith.constant 0 : i32
    return %arg0, %c0_i32, %c0_i32_0, %c0_i32_1 : i32, i32, i32, i32
  }
  func.func @transform_1(%arg0: i32) -> (i32, i32) {
    %c0_i32 = arith.constant 0 : i32
    %c0_i32_0 = arith.constant 0 : i32
    %c0_i32_1 = arith.constant 0 : i32
    return %c0_i32, %c0_i32_0 : i32, i32
  }
  func.func @transform_2(%arg0: i32) -> (i32, i32, i32, i32) {
    %c0_i32 = arith.constant 0 : i32
    %c0_i32_0 = arith.constant 0 : i32
    %c0_i32_1 = arith.constant 0 : i32
    %c0_i32_2 = arith.constant 0 : i32
    return %arg0, %c0_i32, %c0_i32_0, %c0_i32_1 : i32, i32, i32, i32
  }
}

</mosaic_0001>

<bundles_post_ra>
// kernel: tpu_custom_call.1
= control target key start
LH: loop header
LB: loop body
LE: loop exit
PB: predicated region body
PF: predicated region fallthrough
CT: control target
= control target key end

     0   :  { %7 = vsyncpa [#allocation5], 0  ;;  %s4313_s0 = inlined_call_operand.vmem [shape: f32[2,16,16,8], index: 0, kind: input, shape index: {}]   ;;  %s4314_s1 = inlined_call_operand.vmem [shape: f32[72,8], index: 1, kind: input, shape index: {}]   ;;  %s4315_s2 = inlined_call_operand.hbm [shape: f32[2,16,16,16], index: 2, kind: output, shape index: {}]  }
   0x1   :  { %9 = vsyncpa [#allocation5 + $0x1], 0  ;;  %s2949_s9 = smov 0   ;;  %s2951_s10 = smov 0  }
   0x2   :  { %s2953_s11 = smov 0   ;;  %s2955_s12 = smov 0  }
   0x3 LB: > { %s2970_s13 = sadd.s32 4294967295, %s2921_s12   ;;  %s2631_s14 = sadd.s32 4294967294, %s2921_s12   ;;  %s2921_s12 = sphi %s2955_s12, %s4324_s12   ;;  %s2917_s11 = sphi %s2953_s11, %s4323_s11   ;;  %s2913_s10 = sphi %s2951_s10, %s4322_s10   ;;  %s2909_s9 = sphi %s2949_s9, %s4321_s9  }
   0x4   : > { %s2974_s15 = sadd.s32 1, %s2921_s12   ;;  %s69_s16 = sadd.s32 1, %s2917_s11 }
   0x5   : > { %s66_s17 = ssub.s32 %s2921_s12, %s2974_s15  ;;  %p79_p0 = scmp.ne.s32.totalorder %s2917_s11, %s2913_s10 }
   0x6   : > { %p67_p1 = scmp.eq.s32.totalorder %s66_s17, 0  ;;  %p80_p2 = scmp.eq.s32.totalorder %s2970_s13, 1 }
   0x7   : > { %p85_p3 = scmp.ne.s32.totalorder %s2913_s10, %s2909_s9  ;;  %p86_p4 = scmp.eq.s32.totalorder %s2631_s14, 1 }
   0x8   : > { %s2985_s18 = scalar_select %p67_p1, %s2917_s11, %s69_s16  }
   0x9   : > { %p2987_p5 = por %p80_p2, %p79_p0  ;;  %p2991_p6 = por %p86_p4, %p85_p3 }
   0xa   : > { %p2634_p7 = scmp.ge.s32.totalorder %s2921_s12, 1  ;;  %p115_p8 = scmp.lt.s32.totalorder %s2921_s12, 3 }
   0xc   : > { %p116_p9 = pnand %p2634_p7, %p115_p8 }
   0xe   : > { %119 = sbr.rel (%p116_p9) target bundleno = 1059 (0x423), region = 28 }
  0x15   : > { %vm142_vm0 = vcmask 64512   ;;  %vm145_vm1 = vcmask 58368   ;;  %p137_p10 = scmp.lt.s32.totalorder %s2970_s13, 1  ;;  %v2923_v0 = vmov 0.0   ;;  %s2924_s26 = smov 8   ;;  %vm487_vm2 = vcmask 130112  }
  0x16   : > { %143 = vst.msk [vmem:[#allocation2] sm:$0xff] %vm142_vm0, %v2923_v0  ;;  %144 = vst.msk [vmem:[#allocation2 + $0x8] sm:$0xff] %vm142_vm0, %v2923_v0  ;;  %s2925_s27 = smov 16   ;;  %s2926_s28 = smov 24   ;;  %vm680_vm3 = vcmask 195712   ;;  %vm873_vm4 = vcmask 261312  }
  0x17   : > { %147 = vst.msk [vmem:[#allocation2 + $0x18] sm:$0xff] %vm142_vm0, %v2923_v0  ;;  %148 = vst.msk [vmem:[#allocation2 + $0x20] sm:$0xff] %vm142_vm0, %v2923_v0  ;;  %s138_s21 = scalar_select %p137_p10, %s2970_s13, 1  ;;  %vm1066_vm5 = vcmask 326912   ;;  %vm1259_vm6 = vcmask 392512   ;;  %vm1453_vm7 = vcmask 458112  }
  0x18   : > { %150 = vst.msk [vmem:[#allocation2 + $0x30] sm:$0xff] %vm142_vm0, %v2923_v0  ;;  %151 = vst.msk [vmem:[#allocation2 + $0x38] sm:$0xff] %vm142_vm0, %v2923_v0  ;;  %s2927_s29 = smov 32   ;;  %s2928_s30 = smov 40   ;;  %vm1646_vm8 = vcmask 523712   ;;  %vm1839_vm9 = vcmask 589312  }
  0x19   : > { %153 = vst.msk [vmem:[#allocation2 + $0x48] sm:$0xff] %vm142_vm0, %v2923_v0  ;;  %154 = vst.msk [vmem:[#allocation2 + $0x50] sm:$0xff] %vm142_vm0, %v2923_v0  ;;  %s2675_s22 = sshll.u32 %s138_s21, 8  ;;  %s2929_s3 = smov 48   ;;  %vm1913_vm10 = vcmask 588800  }
  0x1a   : > { %156 = vst.msk [vmem:[#allocation2 + $0x60] sm:$0xff] %vm142_vm0, %v2923_v0  ;;  %157 = vst.msk [vmem:[#allocation2 + $0x68] sm:$0xff] %vm142_vm0, %v2923_v0  ;;  %s3058_s25 = scalar_lea.vmem %s4313_s0, %s2675_s22  ;;  %s2930_s21 = smov 56  }
  0x1b   : > { %159 = vst.msk [vmem:[#allocation2 + $0x78] sm:$0xff] %vm142_vm0, %v2923_v0  ;;  %160 = vst.msk [vmem:[#allocation2 + $0x80] sm:$0xff] %vm142_vm0, %v2923_v0  ;;  %v198_v1 = vld [vmem:[%s3058_s25] sm:$0xff]  ;;  %v200_v2 = vld [vmem:[%s3058_s25 + $0x10] sm:$0xff]  ;;  %s2931_s7 = smov 64   ;;  %s2932_s24 = smov [#allocation4]  }
  0x1c   : > { %162 = vst.msk [vmem:[#allocation2 + $0x90] sm:$0xff] %vm142_vm0, %v2923_v0  ;;  %163 = vst.msk [vmem:[#allocation2 + $0x98] sm:$0xff] %vm142_vm0, %v2923_v0  ;;  %v199_v3 = vld [vmem:[%s3058_s25 + $0x8] sm:$0xff]  ;;  %v202_v4 = vld [vmem:[%s3058_s25 + $0x20] sm:$0xff] }
  0x1d   : > { %165 = vst.msk [vmem:[#allocation2 + $0xa8] sm:$0xff] %vm142_vm0, %v2923_v0  ;;  %166 = vst.msk [vmem:[#allocation2 + $0xb0] sm:$0xff] %vm142_vm0, %v2923_v0  ;;  %v201_v5 = vld [vmem:[%s3058_s25 + $0x18] sm:$0xff]  ;;  %v204_v6 = vld [vmem:[%s3058_s25 + $0x30] sm:$0xff] }
  0x1e   : > { %168 = vst.msk [vmem:[#allocation2 + $0xc0] sm:$0xff] %vm142_vm0, %v2923_v0  ;;  %169 = vst.msk [vmem:[#allocation2 + $0xc8] sm:$0xff] %vm142_vm0, %v2923_v0  ;;  %v327_v7 = vld [vmem:[#allocation2 + $0x1] sm:$0xff]  ;;  %v205_v11 = vld [vmem:[%s3058_s25 + $0x38] sm:$0xff] }
  0x1f   : > { %171 = vst.msk [vmem:[#allocation2 + $0xd8] sm:$0xff] %vm142_vm0, %v2923_v0  ;;  %172 = vst.msk [vmem:[#allocation2 + $0xe0] sm:$0xff] %vm142_vm0, %v2923_v0  ;;  %v203_v9 = vld [vmem:[%s3058_s25 + $0x28] sm:$0xff]  ;;  %391 = vrot.lane.b32.xlu0 %v327_v7, %s2924_s26  ;;  %v206_v10 = vld [vmem:[%s3058_s25 + $0x40] sm:$0xff] }
  0x20   : > { %174 = vst.msk [vmem:[#allocation2 + $0xf0] sm:$0xff] %vm142_vm0, %v2923_v0  ;;  %175 = vst.msk [vmem:[#allocation2 + $0xf8] sm:$0xff] %vm142_vm0, %v2923_v0  ;;  %v208_v12 = vld [vmem:[%s3058_s25 + $0x50] sm:$0xff]  ;;  %v207_v13 = vld [vmem:[%s3058_s25 + $0x48] sm:$0xff] }
  0x21   : > { %177 = vst.msk [vmem:[#allocation2 + $0x108] sm:$0xff] %vm142_vm0, %v2923_v0  ;;  %178 = vst.msk [vmem:[#allocation2 + $0x110] sm:$0xff] %vm142_vm0, %v2923_v0  ;;  %v210_v14 = vld [vmem:[%s3058_s25 + $0x60] sm:$0xff]  ;;  %v209_v15 = vld [vmem:[%s3058_s25 + $0x58] sm:$0xff] }
  0x22   : > { %180 = vst.msk [vmem:[#allocation2 + $0x120] sm:$0xff] %vm142_vm0, %v2923_v0  ;;  %181 = vst.msk [vmem:[#allocation2 + $0x128] sm:$0xff] %vm142_vm0, %v2923_v0  ;;  %v212_v16 = vld [vmem:[%s3058_s25 + $0x70] sm:$0xff]  ;;  %v211_v17 = vld [vmem:[%s3058_s25 + $0x68] sm:$0xff] }
  0x23   : > { %183 = vst.msk [vmem:[#allocation2 + $0x138] sm:$0xff] %vm142_vm0, %v2923_v0  ;;  %184 = vst.msk [vmem:[#allocation2 + $0x140] sm:$0xff] %vm142_vm0, %v2923_v0  ;;  %v214_v18 = vld [vmem:[%s3058_s25 + $0x80] sm:$0xff]  ;;  %v213_v19 = vld [vmem:[%s3058_s25 + $0x78] sm:$0xff] }
  0x24   : > { %186 = vst.msk [vmem:[#allocation2 + $0x150] sm:$0xff] %vm142_vm0, %v2923_v0  ;;  %187 = vst.msk [vmem:[#allocation2 + $0x158] sm:$0xff] %vm142_vm0, %v2923_v0  ;;  %v216_v20 = vld [vmem:[%s3058_s25 + $0x90] sm:$0xff]  ;;  %v215_v21 = vld [vmem:[%s3058_s25 + $0x88] sm:$0xff] }
  0x25   : > { %189 = vst.msk [vmem:[#allocation2 + $0x168] sm:$0xff] %vm142_vm0, %v2923_v0  ;;  %190 = vst.msk [vmem:[#allocation2 + $0x170] sm:$0xff] %vm142_vm0, %v2923_v0  ;;  %v218_v22 = vld [vmem:[%s3058_s25 + $0xa0] sm:$0xff]  ;;  %v217_v23 = vld [vmem:[%s3058_s25 + $0x98] sm:$0xff] }
  0x26   : > { %192 = vst.msk [vmem:[#allocation2 + $0x180] sm:$0xff] %vm142_vm0, %v2923_v0  ;;  %193 = vst.msk [vmem:[#allocation2 + $0x188] sm:$0xff] %vm142_vm0, %v2923_v0  ;;  %v220_v24 = vld [vmem:[%s3058_s25 + $0xb0] sm:$0xff]  ;;  %v219_v28 = vld [vmem:[%s3058_s25 + $0xa8] sm:$0xff] }
  0x27   : > { %195 = vst.msk [vmem:[#allocation2 + $0x198] sm:$0xff] %vm142_vm0, %v2923_v0  ;;  %196 = vst.msk [vmem:[#allocation2 + $0x1a0] sm:$0xff] %vm142_vm0, %v2923_v0  ;;  %v222_v29 = vld [vmem:[%s3058_s25 + $0xc0] sm:$0xff]  ;;  %v221_v33 = vld [vmem:[%s3058_s25 + $0xb8] sm:$0xff] }
  0x28   : > { %146 = vst.msk [vmem:[#allocation2 + $0x10] sm:$0x3] %vm145_vm1, %v2923_v0  ;;  %149 = vst.msk [vmem:[#allocation2 + $0x28] sm:$0x3] %vm145_vm1, %v2923_v0  ;;  %v224_v34 = vld [vmem:[%s3058_s25 + $0xd0] sm:$0xff]  ;;  %v223_v35 = vld [vmem:[%s3058_s25 + $0xc8] sm:$0xff] }
  0x29   : > { %152 = vst.msk [vmem:[#allocation2 + $0x40] sm:$0x3] %vm145_vm1, %v2923_v0  ;;  %155 = vst.msk [vmem:[#allocation2 + $0x58] sm:$0x3] %vm145_vm1, %v2923_v0  ;;  %v226_v36 = vld [vmem:[%s3058_s25 + $0xe0] sm:$0xff]  ;;  %v225_v37 = vld [vmem:[%s3058_s25 + $0xd8] sm:$0xff] }
  0x2a   : > { %158 = vst.msk [vmem:[#allocation2 + $0x70] sm:$0x3] %vm145_vm1, %v2923_v0  ;;  %161 = vst.msk [vmem:[#allocation2 + $0x88] sm:$0x3] %vm145_vm1, %v2923_v0  ;;  %v227_v39 = vld [vmem:[%s3058_s25 + $0xe8] sm:$0xff]  ;;  %v263_v45 = vld [vmem:[#allocation2] sm:$0xff] }
  0x2b   : > { %164 = vst.msk [vmem:[#allocation2 + $0xa0] sm:$0x3] %vm145_vm1, %v2923_v0  ;;  %167 = vst.msk [vmem:[#allocation2 + $0xb8] sm:$0x3] %vm145_vm1, %v2923_v0  ;;  %v264_v46 = vld [vmem:[#allocation2 + $0x8] sm:$0xff] }
  0x2c   : > { %170 = vst.msk [vmem:[#allocation2 + $0xd0] sm:$0x3] %vm145_vm1, %v2923_v0  ;;  %173 = vst.msk [vmem:[#allocation2 + $0xe8] sm:$0x3] %vm145_vm1, %v2923_v0 }
  0x2d   : > { %176 = vst.msk [vmem:[#allocation2 + $0x100] sm:$0x3] %vm145_vm1, %v2923_v0  ;;  %179 = vst.msk [vmem:[#allocation2 + $0x118] sm:$0x3] %vm145_vm1, %v2923_v0 }
  0x2e   : > { %182 = vst.msk [vmem:[#allocation2 + $0x130] sm:$0x3] %vm145_vm1, %v2923_v0  ;;  %185 = vst.msk [vmem:[#allocation2 + $0x148] sm:$0x3] %vm145_vm1, %v2923_v0 }
  0x2f   : > { %188 = vst.msk [vmem:[#allocation2 + $0x160] sm:$0x3] %vm145_vm1, %v2923_v0  ;;  %191 = vst.msk [vmem:[#allocation2 + $0x178] sm:$0x3] %vm145_vm1, %v2923_v0  ;;  %v328_v8 = vld [vmem:[#allocation2 + $0x9] sm:$0xff] }
  0x30   : > { %194 = vst.msk [vmem:[#allocation2 + $0x190] sm:$0x3] %vm145_vm1, %v2923_v0  ;;  %197 = vst.msk [vmem:[#allocation2 + $0x1a8] sm:$0x3] %vm145_vm1, %v2923_v0  ;;  %393 = vrot.lane.b32.xlu0 %v328_v8, %s2924_s26 }
  0x31   : > { %231 = vst.msk [vmem:[#allocation2 + $0x19] sm:$0xff] %vm142_vm0, %v198_v1  ;;  %233 = vst.msk [vmem:[#allocation2 + $0x31] sm:$0xff] %vm142_vm0, %v200_v2 }
  0x32   : > { %232 = vst.msk [vmem:[#allocation2 + $0x21] sm:$0xff] %vm142_vm0, %v199_v3  ;;  %235 = vst.msk [vmem:[#allocation2 + $0x49] sm:$0xff] %vm142_vm0, %v202_v4 }
  0x33   : > { %234 = vst.msk [vmem:[#allocation2 + $0x39] sm:$0xff] %vm142_vm0, %v201_v5  ;;  %237 = vst.msk [vmem:[#allocation2 + $0x61] sm:$0xff] %vm142_vm0, %v204_v6 }
  0x34   : > { %236 = vst.msk [vmem:[#allocation2 + $0x51] sm:$0xff] %vm142_vm0, %v203_v9  ;;  %239 = vst.msk [vmem:[#allocation2 + $0x79] sm:$0xff] %vm142_vm0, %v206_v10 }
  0x35   : > { %238 = vst.msk [vmem:[#allocation2 + $0x69] sm:$0xff] %vm142_vm0, %v205_v11  ;;  %241 = vst.msk [vmem:[#allocation2 + $0x91] sm:$0xff] %vm142_vm0, %v208_v12 }
  0x36   : > { %240 = vst.msk [vmem:[#allocation2 + $0x81] sm:$0xff] %vm142_vm0, %v207_v13  ;;  %243 = vst.msk [vmem:[#allocation2 + $0xa9] sm:$0xff] %vm142_vm0, %v210_v14 }
  0x37   : > { %242 = vst.msk [vmem:[#allocation2 + $0x99] sm:$0xff] %vm142_vm0, %v209_v15  ;;  %245 = vst.msk [vmem:[#allocation2 + $0xc1] sm:$0xff] %vm142_vm0, %v212_v16 }
  0x38   : > { %244 = vst.msk [vmem:[#allocation2 + $0xb1] sm:$0xff] %vm142_vm0, %v211_v17  ;;  %247 = vst.msk [vmem:[#allocation2 + $0xd9] sm:$0xff] %vm142_vm0, %v214_v18  ;;  %v3103_v25 = vld [vmem:[#allocation2 + $0x19] sm:$0xff]  ;;  %v3105_v26 = vld [vmem:[#allocation2 + $0x31] sm:$0xff] }
  0x39   : > { %246 = vst.msk [vmem:[#allocation2 + $0xc9] sm:$0xff] %vm142_vm0, %v213_v19  ;;  %249 = vst.msk [vmem:[#allocation2 + $0xf1] sm:$0xff] %vm142_vm0, %v216_v20  ;;  %395 = vrot.lane.b32.xlu1 %v3103_v25, %s2924_s26  ;;  %v3112_v27 = vld [vmem:[#allocation2 + $0x21] sm:$0xff]  ;;  %399 = vrot.lane.b32.xlu0 %v3105_v26, %s2924_s26  ;;  %v3120_v30 = vld [vmem:[#allocation2 + $0x49] sm:$0xff] }
  0x3a   : > { %248 = vst.msk [vmem:[#allocation2 + $0xe1] sm:$0xff] %vm142_vm0, %v215_v21  ;;  %251 = vst.msk [vmem:[#allocation2 + $0x109] sm:$0xff] %vm142_vm0, %v218_v22  ;;  %v3124_v31 = vld [vmem:[#allocation2 + $0x39] sm:$0xff]  ;;  %v335_v32 = vld [vmem:[#allocation2 + $0x61] sm:$0xff] }
  0x3b   : > { %250 = vst.msk [vmem:[#allocation2 + $0xf9] sm:$0xff] %vm142_vm0, %v217_v23  ;;  %253 = vst.msk [vmem:[#allocation2 + $0x121] sm:$0xff] %vm142_vm0, %v220_v24  ;;  %v334_v38 = vld [vmem:[#allocation2 + $0x51] sm:$0xff]  ;;  %v337_v40 = vld [vmem:[#allocation2 + $0x79] sm:$0xff] }
  0x3c   : > { %252 = vst.msk [vmem:[#allocation2 + $0x111] sm:$0xff] %vm142_vm0, %v219_v28  ;;  %255 = vst.msk [vmem:[#allocation2 + $0x139] sm:$0xff] %vm142_vm0, %v222_v29  ;;  %v336_v41 = vld [vmem:[#allocation2 + $0x69] sm:$0xff]  ;;  %v339_v42 = vld [vmem:[#allocation2 + $0x91] sm:$0xff] }
  0x3d   : > { %397 = vrot.lane.b32.xlu1 %v3112_v27, %s2924_s26  ;;  %403 = vrot.lane.b32.xlu0 %v3120_v30, %s2924_s26  ;;  %254 = vst.msk [vmem:[#allocation2 + $0x129] sm:$0xff] %vm142_vm0, %v221_v33  ;;  %257 = vst.msk [vmem:[#allocation2 + $0x151] sm:$0xff] %vm142_vm0, %v224_v34  ;;  %v338_v43 = vld [vmem:[#allocation2 + $0x81] sm:$0xff]  ;;  %v341_v44 = vld [vmem:[#allocation2 + $0xa9] sm:$0xff] }
  0x3e   : > { %256 = vst.msk [vmem:[#allocation2 + $0x141] sm:$0xff] %vm142_vm0, %v223_v35  ;;  %259 = vst.msk [vmem:[#allocation2 + $0x169] sm:$0xff] %vm142_vm0, %v226_v36  ;;  %v340_v47 = vld [vmem:[#allocation2 + $0x99] sm:$0xff]  ;;  %v3155_v49 = vld [vmem:[#allocation2 + $0x30] sm:$0xff] }
  0x3f   : > { %258 = vst.msk [vmem:[#allocation2 + $0x159] sm:$0xff] %vm142_vm0, %v225_v37  ;;  %260 = vst.msk [vmem:[#allocation2 + $0x171] sm:$0xff] %vm142_vm0, %v227_v39  ;;  %v3150_v48 = vld [vmem:[#allocation2 + $0x18] sm:$0xff]  ;;  %v343_v50 = vld [vmem:[#allocation2 + $0xc1] sm:$0xff] }
  0x40   : > { %295 = vst.msk [vmem:[#allocation3] sm:$0xff] %vm142_vm0, %v263_v45  ;;  %296 = vst.msk [vmem:[#allocation3 + $0x8] sm:$0xff] %vm142_vm0, %v264_v46  ;;  %v3159_v51 = vld [vmem:[#allocation2 + $0x20] sm:$0xff]  ;;  %v3161_v52 = vld [vmem:[#allocation2 + $0x48] sm:$0xff] }
  0x41   : > { %401 = vrot.lane.b32.xlu1 %v3124_v31, %s2924_s26  ;;  %407 = vrot.lane.b32.xlu0 %v335_v32, %s2924_s26  ;;  %297 = vst.msk [vmem:[#allocation3 + $0x10] sm:$0xff] %vm142_vm0, %v3150_v48  ;;  %299 = vst.msk [vmem:[#allocation3 + $0x20] sm:$0xff] %vm142_vm0, %v3155_v49  ;;  %v342_v53 = vld [vmem:[#allocation2 + $0xb1] sm:$0xff]  ;;  %v3170_v55 = vld [vmem:[#allocation2 + $0x60] sm:$0xff] }
  0x42   : > { %298 = vst.msk [vmem:[#allocation3 + $0x18] sm:$0xff] %vm142_vm0, %v3159_v51  ;;  %301 = vst.msk [vmem:[#allocation3 + $0x30] sm:$0xff] %vm142_vm0, %v3161_v52  ;;  %v3168_v54 = vld [vmem:[#allocation2 + $0x38] sm:$0xff]  ;;  %v3178_v57 = vld [vmem:[#allocation2 + $0x50] sm:$0xff] }
  0x43   : > { %v3172_v56 = vld [vmem:[#allocation2 + $0xd9] sm:$0xff]  ;;  %300 = vst.msk [vmem:[#allocation3 + $0x28] sm:$0xff] %vm142_vm0, %v3168_v54  ;;  %303 = vst.msk [vmem:[#allocation3 + $0x40] sm:$0xff] %vm142_vm0, %v3170_v55  ;;  %v3182_v59 = vld [vmem:[#allocation2 + $0x68] sm:$0xff] }
  0x44   : > { %v3180_v58 = vld [vmem:[#allocation2 + $0x78] sm:$0xff]  ;;  %302 = vst.msk [vmem:[#allocation3 + $0x38] sm:$0xff] %vm142_vm0, %v3178_v57  ;;  %304 = vst.msk [vmem:[#allocation3 + $0x48] sm:$0xff] %vm142_vm0, %v3182_v59  ;;  %v3191_v60 = vld [vmem:[#allocation2 + $0x90] sm:$0xff] }
  0x45   : > { %405 = vrot.lane.b32.xlu1 %v334_v38, %s2924_s26  ;;  %411 = vrot.lane.b32.xlu0 %v337_v40, %s2924_s26  ;;  %305 = vst.msk [vmem:[#allocation3 + $0x50] sm:$0xff] %vm142_vm0, %v3180_v58  ;;  %v3193_v61 = vld [vmem:[#allocation2 + $0x80] sm:$0xff]  ;;  %v3195_v62 = vld [vmem:[#allocation2 + $0xa8] sm:$0xff]  ;;  %307 = vst.msk [vmem:[#allocation3 + $0x60] sm:$0xff] %vm142_vm0, %v3191_v60 }
  0x46   : > { %v344_v63 = vld [vmem:[#allocation2 + $0xc9] sm:$0xff]  ;;  %306 = vst.msk [vmem:[#allocation3 + $0x58] sm:$0xff] %vm142_vm0, %v3193_v61  ;;  %309 = vst.msk [vmem:[#allocation3 + $0x70] sm:$0xff] %vm142_vm0, %v3195_v62  ;;  %v3203_v0 = vld [vmem:[#allocation2 + $0x98] sm:$0xff] }
  0x47   : > { %v3205_v1 = vld [vmem:[#allocation2 + $0xc0] sm:$0xff]  ;;  %v3207_v2 = vld [vmem:[#allocation2 + $0xb0] sm:$0xff]  ;;  %308 = vst.msk [vmem:[#allocation3 + $0x68] sm:$0xff] %vm142_vm0, %v3203_v0  ;;  %v3216_v3 = vld [vmem:[#allocation2 + $0xd8] sm:$0xff] }
  0x48   : > { %311 = vst.msk [vmem:[#allocation3 + $0x80] sm:$0xff] %vm142_vm0, %v3205_v1  ;;  %310 = vst.msk [vmem:[#allocation3 + $0x78] sm:$0xff] %vm142_vm0, %v3207_v2  ;;  %v3218_v4 = vld [vmem:[#allocation2 + $0xc8] sm:$0xff]  ;;  %v3220_v5 = vld [vmem:[#allocation2 + $0xf0] sm:$0xff] }
  0x49   : > { %409 = vrot.lane.b32.xlu1 %v336_v41, %s2924_s26  ;;  %415 = vrot.lane.b32.xlu0 %v339_v42, %s2924_s26  ;;  %313 = vst.msk [vmem:[#allocation3 + $0x90] sm:$0xff] %vm142_vm0, %v3216_v3  ;;  %312 = vst.msk [vmem:[#allocation3 + $0x88] sm:$0xff] %vm142_vm0, %v3218_v4  ;;  %v3228_v6 = vld [vmem:[#allocation2 + $0xe0] sm:$0xff]  ;;  %v3230_v7 = vld [vmem:[#allocation2 + $0x108] sm:$0xff] }
  0x4a   : > { %315 = vst.msk [vmem:[#allocation3 + $0xa0] sm:$0xff] %vm142_vm0, %v3220_v5  ;;  %v3232_v8 = vld [vmem:[#allocation2 + $0xf8] sm:$0xff]  ;;  %314 = vst.msk [vmem:[#allocation3 + $0x98] sm:$0xff] %vm142_vm0, %v3228_v6  ;;  %v3242_v9 = vld [vmem:[#allocation2 + $0x120] sm:$0xff] }
  0x4b   : > { %317 = vst.msk [vmem:[#allocation3 + $0xb0] sm:$0xff] %vm142_vm0, %v3230_v7  ;;  %316 = vst.msk [vmem:[#allocation3 + $0xa8] sm:$0xff] %vm142_vm0, %v3232_v8  ;;  %v3244_v10 = vld [vmem:[#allocation2 + $0x110] sm:$0xff]  ;;  %v3252_v12 = vld [vmem:[#allocation2 + $0x138] sm:$0xff] }
  0x4c   : > { %v3246_v11 = vld [vmem:[#allocation2 + $0xf1] sm:$0xff]  ;;  %319 = vst.msk [vmem:[#allocation3 + $0xc0] sm:$0xff] %vm142_vm0, %v3242_v9  ;;  %318 = vst.msk [vmem:[#allocation3 + $0xb8] sm:$0xff] %vm142_vm0, %v3244_v10  ;;  %v3257_v13 = vld [vmem:[#allocation2 + $0xe1] sm:$0xff] }
  0x4d   : > { %413 = vrot.lane.b32.xlu1 %v338_v43, %s2924_s26  ;;  %419 = vrot.lane.b32.xlu0 %v341_v44, %s2924_s26  ;;  %321 = vst.msk [vmem:[#allocation3 + $0xd0] sm:$0xff] %vm142_vm0, %v3252_v12  ;;  %v3261_v14 = vld [vmem:[#allocation2 + $0x128] sm:$0xff]  ;;  %v3267_v16 = vld [vmem:[#allocation2 + $0x150] sm:$0xff]  ;;  %v3273_v17 = vld [vmem:[#allocation2 + $0xf9] sm:$0xff] }
  0x4e   : > { %v3263_v15 = vld [vmem:[#allocation2 + $0x109] sm:$0xff]  ;;  %320 = vst.msk [vmem:[#allocation3 + $0xc8] sm:$0xff] %vm142_vm0, %v3261_v14  ;;  %323 = vst.msk [vmem:[#allocation3 + $0xe0] sm:$0xff] %vm142_vm0, %v3267_v16  ;;  %v3277_v18 = vld [vmem:[#allocation2 + $0x140] sm:$0xff] }
  0x4f   : > { %v351_v19 = vld [vmem:[#allocation2 + $0x121] sm:$0xff]  ;;  %322 = vst.msk [vmem:[#allocation3 + $0xd8] sm:$0xff] %vm142_vm0, %v3277_v18  ;;  %v3287_v21 = vld [vmem:[#allocation2 + $0x111] sm:$0xff]  ;;  %v353_v23 = vld [vmem:[#allocation2 + $0x139] sm:$0xff] }
  0x50   : > { %v3281_v20 = vld [vmem:[#allocation2 + $0x168] sm:$0xff]  ;;  %v3290_v22 = vld [vmem:[#allocation2 + $0x158] sm:$0xff]  ;;  %v228_v28 = vld [vmem:[%s3058_s25 + $0xf0] sm:$0xff] }
  0x51   : > { %417 = vrot.lane.b32.xlu1 %v340_v47, %s2924_s26  ;;  %423 = vrot.lane.b32.xlu0 %v343_v50, %s2924_s26  ;;  %325 = vst.msk [vmem:[#allocation3 + $0xf0] sm:$0xff] %vm142_vm0, %v3281_v20  ;;  %324 = vst.msk [vmem:[#allocation3 + $0xe8] sm:$0xff] %vm142_vm0, %v3290_v22  ;;  %v352_v24 = vld [vmem:[#allocation2 + $0x129] sm:$0xff]  ;;  %v355_v32 = vld [vmem:[#allocation2 + $0x151] sm:$0xff] }
  0x52   : > { %v3298_v29 = vld [vmem:[#allocation2 + $0x170] sm:$0xff]  ;;  %261 = vst.msk [vmem:[#allocation2 + $0x181] sm:$0xff] %vm142_vm0, %v228_v28  ;;  %v354_v33 = vld [vmem:[#allocation2 + $0x141] sm:$0xff]  ;;  %v229_v35 = vld [vmem:[%s3058_s25 + $0xf8] sm:$0xff] }
  0x53   : > { %326 = vst.msk [vmem:[#allocation3 + $0xf8] sm:$0xff] %vm142_vm0, %v3298_v29  ;;  %v357_v34 = vld [vmem:[#allocation2 + $0x169] sm:$0xff]  ;;  %v356_v36 = vld [vmem:[#allocation2 + $0x159] sm:$0xff]  ;;  %262 = vst.msk [vmem:[#allocation2 + $0x189] sm:$0xff] %vm142_vm0, %v229_v35 }
  0x54   : > { %v520_v37 = vld [vmem:[#allocation2 + $0x2] sm:$0xff]  ;;  %v358_v38 = vld [vmem:[#allocation2 + $0x171] sm:$0xff]  ;;  %v3311_v39 = vld [vmem:[#allocation2 + $0x1a] sm:$0xff] }
  0x55   : > { %421 = vrot.lane.b32.xlu1 %v342_v53, %s2924_s26  ;;  %427 = vrot.lane.b32.xlu0 %v3172_v56, %s2924_s26  ;;  %v521_v40 = vld [vmem:[#allocation2 + $0xa] sm:$0xff]  ;;  %v3316_v41 = vld [vmem:[#allocation2 + $0x32] sm:$0xff]  ;;  %v3319_v42 = vld [vmem:[#allocation2 + $0x22] sm:$0xff] }
  0x56   : > { %v3323_v43 = vld [vmem:[#allocation2 + $0x4a] sm:$0xff]  ;;  %v3327_v44 = vld [vmem:[#allocation2 + $0x3a] sm:$0xff]  ;;  %v3331_v45 = vld [vmem:[#allocation2 + $0x62] sm:$0xff] }
  0x57   : > { %v3335_v46 = vld [vmem:[#allocation2 + $0x52] sm:$0xff]  ;;  %v530_v47 = vld [vmem:[#allocation2 + $0x7a] sm:$0xff]  ;;  %v3341_v50 = vld [vmem:[#allocation2 + $0x6a] sm:$0xff] }
  0x58   : > { %4319 = vst [vmem:[#allocation7_spill] sm:$0xff] %v3341_v50  ;;  %v532_v53 = vld [vmem:[#allocation2 + $0x92] sm:$0xff]  ;;  %v3359_v35 = vld [vmem:[#allocation2 + $0xe2] sm:$0xff] }
  0x59   : > { %425 = vrot.lane.b32.xlu1 %v344_v63, %s2924_s26  ;;  %431 = vrot.lane.b32.xlu0 %v3246_v11, %s2924_s26  ;;  %v531_v63 = vld [vmem:[#allocation2 + $0x82] sm:$0xff]  ;;  %v535_v28 = vld [vmem:[#allocation2 + $0xb2] sm:$0xff] }
  0x5d   : > { %429 = vrot.lane.b32.xlu1 %v3257_v13, %s2924_s26  ;;  %435 = vrot.lane.b32.xlu0 %v3263_v15, %s2924_s26 }
  0x61   : > { %433 = vrot.lane.b32.xlu1 %v3273_v17, %s2924_s26  ;;  %439 = vrot.lane.b32.xlu0 %v351_v19, %s2924_s26  ;;  %v534_v19 = vld [vmem:[#allocation2 + $0xaa] sm:$0xff] }
  0x65   : > { %437 = vrot.lane.b32.xlu1 %v3287_v21, %s2924_s26  ;;  %443 = vrot.lane.b32.xlu0 %v353_v23, %s2924_s26  ;;  %v533_v23 = vld [vmem:[#allocation2 + $0x9a] sm:$0xff] }
  0x69   : > { %441 = vrot.lane.b32.xlu1 %v352_v24, %s2924_s26  ;;  %447 = vrot.lane.b32.xlu0 %v355_v32, %s2924_s26  ;;  %v536_v24 = vld [vmem:[#allocation2 + $0xc2] sm:$0xff]  ;;  %v3351_v32 = vld [vmem:[#allocation2 + $0xda] sm:$0xff] }
  0x6d   : > { %445 = vrot.lane.b32.xlu1 %v354_v33, %s2924_s26  ;;  %451 = vrot.lane.b32.xlu0 %v357_v34, %s2924_s26  ;;  %v537_v33 = vld [vmem:[#allocation2 + $0xca] sm:$0xff]  ;;  %v3356_v34 = vld [vmem:[#allocation2 + $0xf2] sm:$0xff] }
  0x71   : > { %449 = vrot.lane.b32.xlu1 %v356_v36, %s2924_s26  ;;  %584 = vrot.lane.b32.xlu0 %v520_v37, %s2925_s27  ;;  %v3363_v36 = vld [vmem:[#allocation2 + $0x10a] sm:$0xff]  ;;  %v3367_v37 = vld [vmem:[#allocation2 + $0xfa] sm:$0xff] }
  0x75   : > { %453 = vrot.lane.b32.xlu1 %v358_v38, %s2924_s26  ;;  %588 = vrot.lane.b32.xlu0 %v3311_v39, %s2925_s27  ;;  %v3371_v38 = vld [vmem:[#allocation2 + $0x122] sm:$0xff] }
  0x79   : > { %586 = vrot.lane.b32.xlu1 %v521_v40, %s2925_s27  ;;  %592 = vrot.lane.b32.xlu0 %v3316_v41, %s2925_s27  ;;  %v3375_v40 = vld [vmem:[#allocation2 + $0x112] sm:$0xff] }
  0x7d   : > { %590 = vrot.lane.b32.xlu1 %v3319_v42, %s2925_s27  ;;  %596 = vrot.lane.b32.xlu0 %v3323_v43, %s2925_s27 }
  0x81   : > { %594 = vrot.lane.b32.xlu1 %v3327_v44, %s2925_s27  ;;  %600 = vrot.lane.b32.xlu0 %v3331_v45, %s2925_s27 }
  0x85   : > { %598 = vrot.lane.b32.xlu1 %v3335_v46, %s2925_s27  ;;  %604 = vrot.lane.b32.xlu0 %v530_v47, %s2925_s27  ;;  %v546_v47 = vld [vmem:[#allocation2 + $0x13a] sm:$0xff] }
  0x89   : > { %602 = vrot.lane.b32.xlu1 %v3341_v50, %s2925_s27  ;;  %608 = vrot.lane.b32.xlu0 %v532_v53, %s2925_s27 }
  0x8d   : > { %606 = vrot.lane.b32.xlu1 %v531_v63, %s2925_s27  ;;  %612 = vrot.lane.b32.xlu0 %v534_v19, %s2925_s27  ;;  %v545_v63 = vld [vmem:[#allocation2 + $0x12a] sm:$0xff]  ;;  %v548_v19 = vld [vmem:[#allocation2 + $0x152] sm:$0xff] }
  0x91   : > { %610 = vrot.lane.b32.xlu1 %v533_v23, %s2925_s27  ;;  %616 = vrot.lane.b32.xlu0 %v536_v24, %s2925_s27  ;;  %v392_v53 = vpop.permute.xlu0 %391  ;;  %v547_v24 = vld [vmem:[#allocation2 + $0x142] sm:$0xff] }
  0x92   : > { %488 = vst.msk [vmem:[#allocation3] sm:$0xff] %vm487_vm2, %v392_v53  ;;  %v549_v53 = vld [vmem:[#allocation2 + $0x15a] sm:$0xff] }
  0x95   : > { %614 = vrot.lane.b32.xlu1 %v535_v28, %s2925_s27  ;;  %620 = vrot.lane.b32.xlu0 %v3351_v32, %s2925_s27 }
  0x99   : > { %618 = vrot.lane.b32.xlu1 %v537_v33, %s2925_s27  ;;  %624 = vrot.lane.b32.xlu0 %v3356_v34, %s2925_s27  ;;  %v550_v33 = vld [vmem:[#allocation2 + $0x16a] sm:$0xff] }
  0x9d   : > { %622 = vrot.lane.b32.xlu1 %v3359_v35, %s2925_s27  ;;  %628 = vrot.lane.b32.xlu0 %v3363_v36, %s2925_s27 }
  0xa1   : > { %626 = vrot.lane.b32.xlu1 %v3367_v37, %s2925_s27  ;;  %632 = vrot.lane.b32.xlu0 %v3371_v38, %s2925_s27 }
  0xa2   : > { %v394_v23 = vpop.permute.xlu0 %393 }
  0xa3   : > { %489 = vst.msk [vmem:[#allocation3 + $0x8] sm:$0xff] %vm487_vm2, %v394_v23 }
  0xa5   : > { %630 = vrot.lane.b32.xlu1 %v3375_v40, %s2925_s27  ;;  %636 = vrot.lane.b32.xlu0 %v546_v47, %s2925_s27 }
  0xa9   : > { %634 = vrot.lane.b32.xlu1 %v545_v63, %s2925_s27  ;;  %640 = vrot.lane.b32.xlu0 %v548_v19, %s2925_s27  ;;  %v551_v19 = vld [vmem:[#allocation2 + $0x172] sm:$0xff] }
  0xab   : > { %v396_v28 = vpop.permute.xlu1 %395  ;;  %v400_v50 = vpop.permute.xlu0 %399 }
  0xac   : > { %490 = vst.msk [vmem:[#allocation3 + $0x10] sm:$0xff] %vm487_vm2, %v396_v28  ;;  %492 = vst.msk [vmem:[#allocation3 + $0x20] sm:$0xff] %vm487_vm2, %v400_v50 }
  0xad   : > { %638 = vrot.lane.b32.xlu1 %v547_v24, %s2925_s27  ;;  %644 = vrot.lane.b32.xlu0 %v550_v33, %s2925_s27 }
  0xaf   : > { %v398_v47 = vpop.permute.xlu1 %397  ;;  %v404_v63 = vpop.permute.xlu0 %403 }
  0xb0   : > { %491 = vst.msk [vmem:[#allocation3 + $0x18] sm:$0xff] %vm487_vm2, %v398_v47  ;;  %494 = vst.msk [vmem:[#allocation3 + $0x30] sm:$0xff] %vm487_vm2, %v404_v63 }
  0xb1   : > { %642 = vrot.lane.b32.xlu1 %v549_v53, %s2925_s27  ;;  %777 = vrot.lane.b32.xlu0 %v3150_v48, %s2926_s28 }
  0xb3   : > { %v402_v23 = vpop.permute.xlu1 %401  ;;  %v408_v50 = vpop.permute.xlu0 %407 }
  0xb4   : > { %493 = vst.msk [vmem:[#allocation3 + $0x28] sm:$0xff] %vm487_vm2, %v402_v23  ;;  %496 = vst.msk [vmem:[#allocation3 + $0x40] sm:$0xff] %vm487_vm2, %v408_v50 }
  0xb5   : > { %646 = vrot.lane.b32.xlu1 %v551_v19, %s2925_s27  ;;  %781 = vrot.lane.b32.xlu0 %v3155_v49, %s2926_s28  ;;  %s2863_s27 = sshll.u32 %s2932_s24, 4  ;;  %s2864_s27 = int_to_ptr.vmem [resolvable:$false] %s2863_s27 }
  0xb7   : > { %v406_v24 = vpop.permute.xlu1 %405  ;;  %v412_v28 = vpop.permute.xlu0 %411 }
  0xb8   : > { %495 = vst.msk [vmem:[#allocation3 + $0x38] sm:$0xff] %vm487_vm2, %v406_v24  ;;  %498 = vst.msk [vmem:[#allocation3 + $0x50] sm:$0xff] %vm487_vm2, %v412_v28 }
  0xb9   : > { %779 = vrot.lane.b32.xlu1 %v3159_v51, %s2926_s28  ;;  %785 = vrot.lane.b32.xlu0 %v3161_v52, %s2926_s28 }
  0xbb   : > { %v410_v48 = vpop.permute.xlu1 %409  ;;  %v416_v33 = vpop.permute.xlu0 %415 }
  0xbc   : > { %497 = vst.msk [vmem:[#allocation3 + $0x48] sm:$0xff] %vm487_vm2, %v410_v48  ;;  %500 = vst.msk [vmem:[#allocation3 + $0x60] sm:$0xff] %vm487_vm2, %v416_v33 }
  0xbd   : > { %783 = vrot.lane.b32.xlu1 %v3168_v54, %s2926_s28  ;;  %789 = vrot.lane.b32.xlu0 %v3170_v55, %s2926_s28 }
  0xbf   : > { %v414_v53 = vpop.permute.xlu1 %413  ;;  %v420_v51 = vpop.permute.xlu0 %419 }
  0xc0   : > { %499 = vst.msk [vmem:[#allocation3 + $0x58] sm:$0xff] %vm487_vm2, %v414_v53  ;;  %502 = vst.msk [vmem:[#allocation3 + $0x70] sm:$0xff] %vm487_vm2, %v420_v51 }
  0xc1   : > { %787 = vrot.lane.b32.xlu1 %v3178_v57, %s2926_s28  ;;  %793 = vrot.lane.b32.xlu0 %v3180_v58, %s2926_s28 }
  0xc3   : > { %v418_v47 = vpop.permute.xlu1 %417  ;;  %v424_v63 = vpop.permute.xlu0 %423 }
  0xc4   : > { %501 = vst.msk [vmem:[#allocation3 + $0x68] sm:$0xff] %vm487_vm2, %v418_v47  ;;  %504 = vst.msk [vmem:[#allocation3 + $0x80] sm:$0xff] %vm487_vm2, %v424_v63 }
  0xc5   : > { %791 = vrot.lane.b32.xlu1 %v3182_v59, %s2926_s28  ;;  %797 = vrot.lane.b32.xlu0 %v3191_v60, %s2926_s28 }
  0xc7   : > { %v422_v19 = vpop.permute.xlu1 %421  ;;  %v428_v23 = vpop.permute.xlu0 %427 }
  0xc8   : > { %503 = vst.msk [vmem:[#allocation3 + $0x78] sm:$0xff] %vm487_vm2, %v422_v19  ;;  %506 = vst.msk [vmem:[#allocation3 + $0x90] sm:$0xff] %vm487_vm2, %v428_v23  ;;  %v743_v19 = vld [vmem:[#allocation2 + $0x180] sm:$0xff] }
  0xc9   : > { %795 = vrot.lane.b32.xlu1 %v3193_v61, %s2926_s28  ;;  %801 = vrot.lane.b32.xlu0 %v3195_v62, %s2926_s28 }
  0xcb   : > { %v426_v50 = vpop.permute.xlu1 %425  ;;  %v432_v24 = vpop.permute.xlu0 %431 }
  0xcc   : > { %505 = vst.msk [vmem:[#allocation3 + $0x88] sm:$0xff] %vm487_vm2, %v426_v50  ;;  %508 = vst.msk [vmem:[#allocation3 + $0xa0] sm:$0xff] %vm487_vm2, %v432_v24 }
  0xcd   : > { %799 = vrot.lane.b32.xlu1 %v3203_v0, %s2926_s28  ;;  %805 = vrot.lane.b32.xlu0 %v3205_v1, %s2926_s28 }
  0xcf   : > { %v430_v60 = vpop.permute.xlu1 %429  ;;  %v436_v28 = vpop.permute.xlu0 %435 }
  0xd0   : > { %507 = vst.msk [vmem:[#allocation3 + $0x98] sm:$0xff] %vm487_vm2, %v430_v60  ;;  %510 = vst.msk [vmem:[#allocation3 + $0xb0] sm:$0xff] %vm487_vm2, %v436_v28 }
  0xd1   : > { %803 = vrot.lane.b32.xlu1 %v3207_v2, %s2926_s28  ;;  %809 = vrot.lane.b32.xlu0 %v3216_v3, %s2926_s28 }
  0xd3   : > { %v434_v62 = vpop.permute.xlu1 %433  ;;  %v440_v0 = vpop.permute.xlu0 %439 }
  0xd4   : > { %509 = vst.msk [vmem:[#allocation3 + $0xa8] sm:$0xff] %vm487_vm2, %v434_v62  ;;  %512 = vst.msk [vmem:[#allocation3 + $0xc0] sm:$0xff] %vm487_vm2, %v440_v0 }
  0xd5   : > { %807 = vrot.lane.b32.xlu1 %v3218_v4, %s2926_s28  ;;  %813 = vrot.lane.b32.xlu0 %v3220_v5, %s2926_s28 }
  0xd7   : > { %v438_v1 = vpop.permute.xlu1 %437  ;;  %v444_v2 = vpop.permute.xlu0 %443 }
  0xd8   : > { %511 = vst.msk [vmem:[#allocation3 + $0xb8] sm:$0xff] %vm487_vm2, %v438_v1  ;;  %514 = vst.msk [vmem:[#allocation3 + $0xd0] sm:$0xff] %vm487_vm2, %v444_v2 }
  0xd9   : > { %811 = vrot.lane.b32.xlu1 %v3228_v6, %s2926_s28  ;;  %817 = vrot.lane.b32.xlu0 %v3230_v7, %s2926_s28 }
  0xdb   : > { %v442_v3 = vpop.permute.xlu1 %441  ;;  %v448_v4 = vpop.permute.xlu0 %447 }
  0xdc   : > { %513 = vst.msk [vmem:[#allocation3 + $0xc8] sm:$0xff] %vm487_vm2, %v442_v3  ;;  %516 = vst.msk [vmem:[#allocation3 + $0xe0] sm:$0xff] %vm487_vm2, %v448_v4  ;;  %v1906_v4 = vld [vmem:[%s4314_s1 + $0x10] sm:$0xff] }
  0xdd   : > { %815 = vrot.lane.b32.xlu1 %v3232_v8, %s2926_s28  ;;  %821 = vrot.lane.b32.xlu0 %v3242_v9, %s2926_s28 }
  0xdf   : > { %v446_v48 = vpop.permute.xlu1 %445  ;;  %v452_v6 = vpop.permute.xlu0 %451 }
  0xe0   : > { %515 = vst.msk [vmem:[#allocation3 + $0xd8] sm:$0xff] %vm487_vm2, %v446_v48  ;;  %518 = vst.msk [vmem:[#allocation3 + $0xf0] sm:$0xff] %vm487_vm2, %v452_v6  ;;  %v1907_v48 = vld [vmem:[%s4314_s1 + $0x18] sm:$0xff] }
  0xe1   : > { %819 = vrot.lane.b32.xlu1 %v3244_v10, %s2926_s28  ;;  %825 = vrot.lane.b32.xlu0 %v3252_v12, %s2926_s28 }
  0xe3   : > { %v450_v33 = vpop.permute.xlu1 %449  ;;  %v585_v53 = vpop.permute.xlu0 %584 }
  0xe4   : > { %517 = vst.msk [vmem:[#allocation3 + $0xe8] sm:$0xff] %vm487_vm2, %v450_v33  ;;  %v1908_v33 = vld [vmem:[%s4314_s1 + $0x20] sm:$0xff] }
  0xe5   : > { %823 = vrot.lane.b32.xlu1 %v3261_v14, %s2926_s28  ;;  %681 = vst.msk [vmem:[#allocation3] sm:$0xff] %vm680_vm3, %v585_v53  ;;  %829 = vrot.lane.b32.xlu0 %v3267_v16, %s2926_s28  ;;  %v1909_v53 = vld [vmem:[%s4314_s1 + $0x28] sm:$0xff] }
  0xe7   : > { %v454_v51 = vpop.permute.xlu1 %453  ;;  %v589_v47 = vpop.permute.xlu0 %588 }
  0xe8   : > { %519 = vst.msk [vmem:[#allocation3 + $0xf8] sm:$0xff] %vm487_vm2, %v454_v51  ;;  %v2792_v51 = vpack.c.bf16 %v1909_v53, %v1908_v33 }
  0xe9   : > { %827 = vrot.lane.b32.xlu1 %v3277_v18, %s2926_s28  ;;  %683 = vst.msk [vmem:[#allocation3 + $0x10] sm:$0xff] %vm680_vm3, %v589_v47  ;;  %833 = vrot.lane.b32.xlu0 %v3281_v20, %s2926_s28  ;;  %v744_v20 = vld [vmem:[#allocation2 + $0x188] sm:$0xff] }
  0xeb   : > { %v587_v63 = vpop.permute.xlu1 %586  ;;  %v593_v23 = vpop.permute.xlu0 %592 }
  0xec   : > { %682 = vst.msk [vmem:[#allocation3 + $0x8] sm:$0xff] %vm680_vm3, %v587_v63  ;;  %685 = vst.msk [vmem:[#allocation3 + $0x20] sm:$0xff] %vm680_vm3, %v593_v23  ;;  %v1910_v63 = vld [vmem:[%s4314_s1 + $0x30] sm:$0xff] }
  0xed   : > { %831 = vrot.lane.b32.xlu1 %v3290_v22, %s2926_s28  ;;  %837 = vrot.lane.b32.xlu0 %v743_v19, %s2926_s28  ;;  %v1911_v19 = vld [vmem:[%s4314_s1 + $0x38] sm:$0xff] }
  0xef   : > { %v591_v50 = vpop.permute.xlu1 %590  ;;  %v597_v24 = vpop.permute.xlu0 %596 }
  0xf0   : > { %684 = vst.msk [vmem:[#allocation3 + $0x18] sm:$0xff] %vm680_vm3, %v591_v50  ;;  %687 = vst.msk [vmem:[#allocation3 + $0x30] sm:$0xff] %vm680_vm3, %v597_v24  ;;  %v1912_v24 = vld [vmem:[%s4314_s1 + $0x40] sm:$0xff] }
  0xf1   : > { %835 = vrot.lane.b32.xlu1 %v3298_v29, %s2926_s28  ;;  %970 = vrot.lane.b32.xlu0 %v3103_v25, %s2927_s29 }
  0xf3   : > { %v595_v60 = vpop.permute.xlu1 %594  ;;  %v601_v28 = vpop.permute.xlu0 %600 }
  0xf4   : > { %686 = vst.msk [vmem:[#allocation3 + $0x28] sm:$0xff] %vm680_vm3, %v595_v60  ;;  %689 = vst.msk [vmem:[#allocation3 + $0x40] sm:$0xff] %vm680_vm3, %v601_v28 }
  0xf5   : > { %839 = vrot.lane.b32.xlu1 %v744_v20, %s2926_s28  ;;  %974 = vrot.lane.b32.xlu0 %v3105_v26, %s2927_s29  ;;  %s2865_s28 = scalar_lea.vmem %s2864_s27, 8192 }
  0xf7   : > { %v599_v62 = vpop.permute.xlu1 %598  ;;  %v605_v29 = vpop.permute.xlu0 %604 }
  0xf8   : > { %688 = vst.msk [vmem:[#allocation3 + $0x38] sm:$0xff] %vm680_vm3, %v599_v62  ;;  %691 = vst.msk [vmem:[#allocation3 + $0x50] sm:$0xff] %vm680_vm3, %v605_v29 }
  0xf9   : > { %972 = vrot.lane.b32.xlu1 %v3112_v27, %s2927_s29  ;;  %978 = vrot.lane.b32.xlu0 %v3120_v30, %s2927_s29 }
  0xfb   : > { %v603_v25 = vpop.permute.xlu1 %602  ;;  %v609_v0 = vpop.permute.xlu0 %608 }
  0xfc   : > { %690 = vst.msk [vmem:[#allocation3 + $0x48] sm:$0xff] %vm680_vm3, %v603_v25  ;;  %693 = vst.msk [vmem:[#allocation3 + $0x60] sm:$0xff] %vm680_vm3, %v609_v0 }
  0xfd   : > { %976 = vrot.lane.b32.xlu1 %v3124_v31, %s2927_s29  ;;  %1004 = vrot.lane.b32.xlu0 %v3257_v13, %s2927_s29 }
  0xff   : > { %v607_v1 = vpop.permute.xlu1 %606  ;;  %v613_v27 = vpop.permute.xlu0 %612 }
 0x100   : > { %692 = vst.msk [vmem:[#allocation3 + $0x58] sm:$0xff] %vm680_vm3, %v607_v1  ;;  %695 = vst.msk [vmem:[#allocation3 + $0x70] sm:$0xff] %vm680_vm3, %v613_v27 }
 0x101   : > { %1002 = vrot.lane.b32.xlu1 %v3172_v56, %s2927_s29  ;;  %1195 = vrot.lane.b32.xlu0 %v3351_v32, %s2928_s30 }
 0x103   : > { %v611_v30 = vpop.permute.xlu1 %610  ;;  %v617_v2 = vpop.permute.xlu0 %616 }
 0x104   : > { %694 = vst.msk [vmem:[#allocation3 + $0x68] sm:$0xff] %vm680_vm3, %v611_v30  ;;  %697 = vst.msk [vmem:[#allocation3 + $0x80] sm:$0xff] %vm680_vm3, %v617_v2 }
 0x105   : > { %1163 = vrot.lane.b32.xlu1 %v3311_v39, %s2928_s30  ;;  %1197 = vrot.lane.b32.xlu0 %v3359_v35, %s2928_s30  ;;  %v1904_v35 = vld [vmem:[%s4314_s1] sm:$0xff] }
 0x107   : > { %v615_v13 = vpop.permute.xlu1 %614  ;;  %v621_v56 = vpop.permute.xlu0 %620 }
 0x108   : > { %696 = vst.msk [vmem:[#allocation3 + $0x78] sm:$0xff] %vm680_vm3, %v615_v13  ;;  %699 = vst.msk [vmem:[#allocation3 + $0x90] sm:$0xff] %vm680_vm3, %v621_v56  ;;  %v927_v13 = vld [vmem:[#allocation2 + $0x111] sm:$0xff] }
 0x109   : > { %1165 = vrot.lane.b32.xlu1 %v3319_v42, %s2928_s30  ;;  %1389 = vrot.lane.b32.xlu0 %v3220_v5, %s2929_s3  ;;  %v1905_v42 = vld [vmem:[%s4314_s1 + $0x8] sm:$0xff] }
 0x10a   : > { %v2784_v3 = vpack.c.bf16 %v1905_v42, %v1904_v35 }
 0x10b   : > { %v619_v32 = vpop.permute.xlu1 %618  ;;  %v625_v39 = vpop.permute.xlu0 %624 }
 0x10c   : > { %698 = vst.msk [vmem:[#allocation3 + $0x88] sm:$0xff] %vm680_vm3, %v619_v32  ;;  %701 = vst.msk [vmem:[#allocation3 + $0xa0] sm:$0xff] %vm680_vm3, %v625_v39  ;;  %2800 = vmatprep.subr.bf16.mxu1 %v2784_v3  ;;  %2785 = vmatprep.subr.bf16.mxu0 %v2784_v3 }
 0x10d   : > { %1357 = vrot.lane.b32.xlu1 %v3155_v49, %s2929_s3  ;;  %1391 = vrot.lane.b32.xlu0 %v3232_v8, %s2929_s3  ;;  %v2788_v8 = vpack.c.bf16 %v1907_v48, %v1906_v4 }
 0x10e   : > { %2805 = vmatpush3.bf16.msra.mxu1 %v2784_v3  ;;  %2787 = vmatpush3.bf16.msra.mxu0 %v2784_v3  ;;  %v1490_v3 = vld [vmem:[#allocation2 + $0x61] sm:$0xff] }
 0x10f   : > { %v623_v5 = vpop.permute.xlu1 %622  ;;  %v629_v49 = vpop.permute.xlu0 %628  ;;  %2801 = vmatprep.subr.bf16.mxu1 %v2788_v8  ;;  %2789 = vmatprep.subr.bf16.mxu0 %v2788_v8 }
 0x110   : > { %700 = vst.msk [vmem:[#allocation3 + $0x98] sm:$0xff] %vm680_vm3, %v623_v5  ;;  %703 = vst.msk [vmem:[#allocation3 + $0xb0] sm:$0xff] %vm680_vm3, %v629_v49 }
 0x111   : > { %1359 = vrot.lane.b32.xlu1 %v3168_v54, %s2929_s3  ;;  %1582 = vrot.lane.b32.xlu0 %v3246_v11, %s2930_s21 }
 0x112   : > { %2806 = vmatpush3.bf16.msra.mxu1 %v2788_v8  ;;  %2791 = vmatpush3.bf16.msra.mxu0 %v2788_v8  ;;  %v1507_v8 = vld [vmem:[#allocation2 + $0x129] sm:$0xff] }
 0x113   : > { %v627_v6 = vpop.permute.xlu1 %626  ;;  %v633_v54 = vpop.permute.xlu0 %632  ;;  %2802 = vmatprep.subr.bf16.mxu1 %v2792_v51  ;;  %2793 = vmatprep.subr.bf16.mxu0 %v2792_v51 }
 0x114   : > { %702 = vst.msk [vmem:[#allocation3 + $0xa8] sm:$0xff] %vm680_vm3, %v627_v6  ;;  %705 = vst.msk [vmem:[#allocation3 + $0xc0] sm:$0xff] %vm680_vm3, %v633_v54 }
 0x115   : > { %1550 = vrot.lane.b32.xlu1 %v3105_v26, %s2930_s21  ;;  %1552 = vrot.lane.b32.xlu0 %v3124_v31, %s2930_s21  ;;  %v2796_v31 = vpack.c.bf16 %v1911_v19, %v1910_v63  ;;  %v4320_v63 = vld [vmem:[#allocation7_spill] sm:$0xff] }
 0x116   : > { %2807 = vmatpush3.bf16.msra.mxu1 %v2792_v51  ;;  %2795 = vmatpush3.bf16.msra.mxu0 %v2792_v51 }
 0x117   : > { %v631_v47 = vpop.permute.xlu1 %630  ;;  %v637_v26 = vpop.permute.xlu0 %636  ;;  %2803 = vmatprep.subr.bf16.mxu1 %v2796_v31  ;;  %2797 = vmatprep.subr.bf16.mxu0 %v2796_v31 }
 0x118   : > { %704 = vst.msk [vmem:[#allocation3 + $0xb8] sm:$0xff] %vm680_vm3, %v631_v47  ;;  %707 = vst.msk [vmem:[#allocation3 + $0xd0] sm:$0xff] %vm680_vm3, %v637_v26  ;;  %v1121_v26 = vld [vmem:[#allocation2 + $0x122] sm:$0xff] }
 0x119   : > { %1006 = vrot.lane.b32.xlu1 %v3246_v11, %s2927_s29  ;;  %1743 = vrot.lane.b32.xlu0 %v3316_v41, %s2931_s7 }
 0x11a   : > { %2808 = vmatpush3.bf16.msra.mxu1 %v2796_v31  ;;  %2799 = vmatpush3.bf16.msra.mxu0 %v2796_v31 }
 0x11b   : > { %v635_v23 = vpop.permute.xlu1 %634  ;;  %v641_v11 = vpop.permute.xlu0 %640  ;;  %2804 = vmatprep.subr.mxu1 %v1912_v24  ;;  %2734 = vmatprep.subr.mxu0 %v1912_v24 }
 0x11c   : > { %706 = vst.msk [vmem:[#allocation3 + $0xc8] sm:$0xff] %vm680_vm3, %v635_v23  ;;  %709 = vst.msk [vmem:[#allocation3 + $0xe0] sm:$0xff] %vm680_vm3, %v641_v11 }
 0x11d   : > { %1584 = vrot.lane.b32.xlu1 %v3273_v17, %s2930_s21  ;;  %1008 = vrot.lane.b32.xlu0 %v3273_v17, %s2927_s29 }
 0x11e   : > { %2809 = vmatpush3.msra.mxu1 %v1912_v24  ;;  %2735 = vmatpush3.msra.mxu0 %v1912_v24 }
 0x11f   : > { %v639_v50 = vpop.permute.xlu1 %638  ;;  %v645_v20 = vpop.permute.xlu0 %644 }
 0x120   : > { %708 = vst.msk [vmem:[#allocation3 + $0xd8] sm:$0xff] %vm680_vm3, %v639_v50  ;;  %711 = vst.msk [vmem:[#allocation3 + $0xf0] sm:$0xff] %vm680_vm3, %v645_v20 }
 0x121   : > { %1775 = vrot.lane.b32.xlu1 %v3356_v34, %s2931_s7  ;;  %1199 = vrot.lane.b32.xlu0 %v3356_v34, %s2928_s30 }
 0x123   : > { %v643_v17 = vpop.permute.xlu1 %642  ;;  %v778_v60 = vpop.permute.xlu0 %777 }
 0x124   : > { %710 = vst.msk [vmem:[#allocation3 + $0xe8] sm:$0xff] %vm680_vm3, %v643_v17  ;;  %v1492_v17 = vld [vmem:[#allocation2 + $0x79] sm:$0xff] }
 0x125   : > { %1167 = vrot.lane.b32.xlu1 %v3316_v41, %s2928_s30  ;;  %874 = vst.msk [vmem:[#allocation3] sm:$0xff] %vm873_vm4, %v778_v60  ;;  %1777 = vrot.lane.b32.xlu0 %v3367_v37, %s2931_s7 }
 0x127   : > { %v647_v28 = vpop.permute.xlu1 %646  ;;  %v782_v62 = vpop.permute.xlu0 %781 }
 0x128   : > { %712 = vst.msk [vmem:[#allocation3 + $0xf8] sm:$0xff] %vm680_vm3, %v647_v28 }
 0x129   : > { %1745 = vrot.lane.b32.xlu1 %v3327_v44, %s2931_s7  ;;  %876 = vst.msk [vmem:[#allocation3 + $0x10] sm:$0xff] %vm873_vm4, %v782_v62  ;;  %1201 = vrot.lane.b32.xlu0 %v3367_v37, %s2928_s30 }
 0x12b   : > { %v780_v34 = vpop.permute.xlu1 %779  ;;  %v786_v41 = vpop.permute.xlu0 %785 }
 0x12c   : > { %875 = vst.msk [vmem:[#allocation3 + $0x8] sm:$0xff] %vm873_vm4, %v780_v34  ;;  %878 = vst.msk [vmem:[#allocation3 + $0x20] sm:$0xff] %vm873_vm4, %v786_v41  ;;  %v1493_v34 = vld [vmem:[#allocation2 + $0x81] sm:$0xff] }
 0x12d   : > { %1169 = vrot.lane.b32.xlu1 %v3327_v44, %s2928_s30  ;;  %1393 = vrot.lane.b32.xlu0 %v3230_v7, %s2929_s3  ;;  %v1488_v7 = vld [vmem:[#allocation2 + $0x49] sm:$0xff] }
 0x12f   : > { %v784_v29 = vpop.permute.xlu1 %783  ;;  %v790_v25 = vpop.permute.xlu0 %789 }
 0x130   : > { %877 = vst.msk [vmem:[#allocation3 + $0x18] sm:$0xff] %vm873_vm4, %v784_v29  ;;  %880 = vst.msk [vmem:[#allocation3 + $0x30] sm:$0xff] %vm873_vm4, %v790_v25  ;;  %v1685_v29 = vld [vmem:[#allocation2 + $0x7a] sm:$0xff] }
 0x131   : > { %1361 = vrot.lane.b32.xlu1 %v3161_v52, %s2929_s3  ;;  %1395 = vrot.lane.b32.xlu0 %v3244_v10, %s2929_s3  ;;  %v1489_v52 = vld [vmem:[#allocation2 + $0x51] sm:$0xff]  ;;  %v1509_v25 = vld [vmem:[#allocation2 + $0x141] sm:$0xff] }
 0x133   : > { %v788_v37 = vpop.permute.xlu1 %787  ;;  %v794_v44 = vpop.permute.xlu0 %793 }
 0x134   : > { %879 = vst.msk [vmem:[#allocation3 + $0x28] sm:$0xff] %vm873_vm4, %v788_v37  ;;  %882 = vst.msk [vmem:[#allocation3 + $0x40] sm:$0xff] %vm873_vm4, %v794_v44 }
 0x135   : > { %1363 = vrot.lane.b32.xlu1 %v3178_v57, %s2929_s3  ;;  %1586 = vrot.lane.b32.xlu0 %v3263_v15, %s2930_s21 }
 0x137   : > { %v792_v0 = vpop.permute.xlu1 %791  ;;  %v798_v1 = vpop.permute.xlu0 %797 }
 0x138   : > { %881 = vst.msk [vmem:[#allocation3 + $0x38] sm:$0xff] %vm873_vm4, %v792_v0  ;;  %884 = vst.msk [vmem:[#allocation3 + $0x50] sm:$0xff] %vm873_vm4, %v798_v1 }
 0x139   : > { %1554 = vrot.lane.b32.xlu1 %v1488_v7, %s2930_s21  ;;  %1556 = vrot.lane.b32.xlu0 %v1489_v52, %s2930_s21  ;;  %v1701_v7 = vld [vmem:[#allocation2 + $0x13a] sm:$0xff] }
 0x13b   : > { %v796_v10 = vpop.permute.xlu1 %795  ;;  %v802_v57 = vpop.permute.xlu0 %801 }
 0x13c   : > { %883 = vst.msk [vmem:[#allocation3 + $0x48] sm:$0xff] %vm873_vm4, %v796_v10  ;;  %886 = vst.msk [vmem:[#allocation3 + $0x60] sm:$0xff] %vm873_vm4, %v802_v57  ;;  %v1686_v57 = vld [vmem:[#allocation2 + $0x82] sm:$0xff] }
 0x13d   : > { %1010 = vrot.lane.b32.xlu1 %v3263_v15, %s2927_s29  ;;  %1747 = vrot.lane.b32.xlu0 %v3323_v43, %s2931_s7 }
 0x13f   : > { %v800_v27 = vpop.permute.xlu1 %799  ;;  %v806_v30 = vpop.permute.xlu0 %805 }
 0x140   : > { %885 = vst.msk [vmem:[#allocation3 + $0x58] sm:$0xff] %vm873_vm4, %v800_v27  ;;  %888 = vst.msk [vmem:[#allocation3 + $0x70] sm:$0xff] %vm873_vm4, %v806_v30 }
 0x141   : > { %1588 = vrot.lane.b32.xlu1 %v3287_v21, %s2930_s21  ;;  %980 = vrot.lane.b32.xlu0 %v1489_v52, %s2927_s29 }
 0x143   : > { %v804_v2 = vpop.permute.xlu1 %803  ;;  %v810_v15 = vpop.permute.xlu0 %809 }
 0x144   : > { %887 = vst.msk [vmem:[#allocation3 + $0x68] sm:$0xff] %vm873_vm4, %v804_v2  ;;  %890 = vst.msk [vmem:[#allocation3 + $0x80] sm:$0xff] %vm873_vm4, %v810_v15 }
 0x145   : > { %1779 = vrot.lane.b32.xlu1 %v3363_v36, %s2931_s7  ;;  %1171 = vrot.lane.b32.xlu0 %v3323_v43, %s2928_s30 }
 0x147   : > { %v808_v56 = vpop.permute.xlu1 %807  ;;  %v814_v21 = vpop.permute.xlu0 %813 }
 0x148   : > { %889 = vst.msk [vmem:[#allocation3 + $0x78] sm:$0xff] %vm873_vm4, %v808_v56  ;;  %892 = vst.msk [vmem:[#allocation3 + $0x90] sm:$0xff] %vm873_vm4, %v814_v21  ;;  %v1301_v21 = vld [vmem:[#allocation2 + $0x90] sm:$0xff] }
 0x149   : > { %1012 = vrot.lane.b32.xlu1 %v927_v13, %s2927_s29  ;;  %1749 = vrot.lane.b32.xlu0 %v3335_v46, %s2931_s7  ;;  %v1702_v13 = vld [vmem:[#allocation2 + $0x142] sm:$0xff] }
 0x14b   : > { %v812_v32 = vpop.permute.xlu1 %811  ;;  %v818_v39 = vpop.permute.xlu0 %817 }
 0x14c   : > { %891 = vst.msk [vmem:[#allocation3 + $0x88] sm:$0xff] %vm873_vm4, %v812_v32  ;;  %894 = vst.msk [vmem:[#allocation3 + $0xa0] sm:$0xff] %vm873_vm4, %v818_v39 }
 0x14d   : > { %1203 = vrot.lane.b32.xlu1 %v3363_v36, %s2928_s30  ;;  %1173 = vrot.lane.b32.xlu0 %v3335_v46, %s2928_s30 }
 0x14f   : > { %v816_v43 = vpop.permute.xlu1 %815  ;;  %v822_v35 = vpop.permute.xlu0 %821 }
 0x150   : > { %893 = vst.msk [vmem:[#allocation3 + $0x98] sm:$0xff] %vm873_vm4, %v816_v43  ;;  %896 = vst.msk [vmem:[#allocation3 + $0xb0] sm:$0xff] %vm873_vm4, %v822_v35 }
 0x151   : > { %1781 = vrot.lane.b32.xlu1 %v3375_v40, %s2931_s7  ;;  %1365 = vrot.lane.b32.xlu0 %v3170_v55, %s2929_s3 }
 0x153   : > { %v820_v42 = vpop.permute.xlu1 %819  ;;  %v826_v36 = vpop.permute.xlu0 %825 }
 0x154   : > { %895 = vst.msk [vmem:[#allocation3 + $0xa8] sm:$0xff] %vm873_vm4, %v820_v42  ;;  %898 = vst.msk [vmem:[#allocation3 + $0xc0] sm:$0xff] %vm873_vm4, %v826_v36  ;;  %v1302_v42 = vld [vmem:[#allocation2 + $0x98] sm:$0xff] }
 0x155   : > { %1205 = vrot.lane.b32.xlu1 %v3375_v40, %s2928_s30  ;;  %1367 = vrot.lane.b32.xlu0 %v3182_v59, %s2929_s3  ;;  %v1506_v59 = vld [vmem:[#allocation2 + $0x121] sm:$0xff] }
 0x157   : > { %v824_v46 = vpop.permute.xlu1 %823  ;;  %v830_v5 = vpop.permute.xlu0 %829 }
 0x158   : > { %897 = vst.msk [vmem:[#allocation3 + $0xb8] sm:$0xff] %vm873_vm4, %v824_v46  ;;  %900 = vst.msk [vmem:[#allocation3 + $0xd0] sm:$0xff] %vm873_vm4, %v830_v5 }
 0x159   : > { %1397 = vrot.lane.b32.xlu1 %v3242_v9, %s2929_s3  ;;  %1558 = vrot.lane.b32.xlu0 %v1490_v3, %s2930_s21  ;;  %v1491_v9 = vld [vmem:[#allocation2 + $0x69] sm:$0xff] }
 0x15b   : > { %v828_v55 = vpop.permute.xlu1 %827  ;;  %v834_v40 = vpop.permute.xlu0 %833 }
 0x15c   : > { %899 = vst.msk [vmem:[#allocation3 + $0xc8] sm:$0xff] %vm873_vm4, %v828_v55  ;;  %902 = vst.msk [vmem:[#allocation3 + $0xe0] sm:$0xff] %vm873_vm4, %v834_v40 }
 0x15d   : > { %1399 = vrot.lane.b32.xlu1 %v3261_v14, %s2929_s3  ;;  %982 = vrot.lane.b32.xlu0 %v1490_v3, %s2927_s29  ;;  %v1494_v3 = vld [vmem:[#allocation2 + $0x91] sm:$0xff] }
 0x15f   : > { %v832_v49 = vpop.permute.xlu1 %831  ;;  %v838_v4 = vpop.permute.xlu0 %837 }
 0x160   : > { %901 = vst.msk [vmem:[#allocation3 + $0xd8] sm:$0xff] %vm873_vm4, %v832_v49  ;;  %904 = vst.msk [vmem:[#allocation3 + $0xf0] sm:$0xff] %vm873_vm4, %v838_v4 }
 0x161   : > { %1590 = vrot.lane.b32.xlu1 %v1506_v59, %s2930_s21  ;;  %1560 = vrot.lane.b32.xlu0 %v1491_v9, %s2930_s21 }
 0x163   : > { %v836_v48 = vpop.permute.xlu1 %835  ;;  %v971_v14 = vpop.permute.xlu0 %970 }
 0x164   : > { %903 = vst.msk [vmem:[#allocation3 + $0xe8] sm:$0xff] %vm873_vm4, %v836_v48  ;;  %v1687_v48 = vld [vmem:[#allocation2 + $0x92] sm:$0xff] }
 0x165   : > { %1014 = vrot.lane.b32.xlu1 %v1506_v59, %s2927_s29  ;;  %1067 = vst.msk [vmem:[#allocation3] sm:$0xff] %vm1066_vm5, %v971_v14  ;;  %1751 = vrot.lane.b32.xlu0 %v3331_v45, %s2931_s7  ;;  %v1510_v59 = vld [vmem:[#allocation2 + $0x151] sm:$0xff]  ;;  %v1511_v14 = vld [vmem:[#allocation2 + $0x159] sm:$0xff] }
 0x167   : > { %v840_v6 = vpop.permute.xlu1 %839  ;;  %v975_v54 = vpop.permute.xlu0 %974 }
 0x168   : > { %905 = vst.msk [vmem:[#allocation3 + $0xf8] sm:$0xff] %vm873_vm4, %v840_v6 }
 0x169   : > { %1592 = vrot.lane.b32.xlu1 %v1507_v8, %s2930_s21  ;;  %1069 = vst.msk [vmem:[#allocation3 + $0x10] sm:$0xff] %vm1066_vm5, %v975_v54  ;;  %984 = vrot.lane.b32.xlu0 %v1491_v9, %s2927_s29  ;;  %v1495_v9 = vld [vmem:[#allocation2 + $0x99] sm:$0xff] }
 0x16b   : > { %v973_v33 = vpop.permute.xlu1 %972  ;;  %v979_v53 = vpop.permute.xlu0 %978 }
 0x16c   : > { %1068 = vst.msk [vmem:[#allocation3 + $0x8] sm:$0xff] %vm1066_vm5, %v973_v33  ;;  %1071 = vst.msk [vmem:[#allocation3 + $0x20] sm:$0xff] %vm1066_vm5, %v979_v53  ;;  %v1703_v33 = vld [vmem:[#allocation2 + $0x152] sm:$0xff] }
 0x16d   : > { %1783 = vrot.lane.b32.xlu1 %v3371_v38, %s2931_s7  ;;  %1175 = vrot.lane.b32.xlu0 %v3331_v45, %s2928_s30  ;;  %v1106_v38 = vld [vmem:[#allocation2 + $0x6a] sm:$0xff] }
 0x16e   : > { %v1700_v45 = vld [vmem:[#allocation2 + $0x12a] sm:$0xff] }
 0x16f   : > { %v977_v51 = vpop.permute.xlu1 %976  ;;  %v1005_v47 = vpop.permute.xlu0 %1004 }
 0x170   : > { %1070 = vst.msk [vmem:[#allocation3 + $0x18] sm:$0xff] %vm1066_vm5, %v977_v51  ;;  %1084 = vst.msk [vmem:[#allocation3 + $0x88] sm:$0xff] %vm1066_vm5, %v1005_v47 }
 0x171   : > { %1016 = vrot.lane.b32.xlu1 %v1507_v8, %s2927_s29  ;;  %1753 = vrot.lane.b32.xlu0 %v4320_v63, %s2931_s7  ;;  %v1688_v63 = vld [vmem:[#allocation2 + $0x9a] sm:$0xff] }
 0x173   : > { %v1003_v19 = vpop.permute.xlu1 %1002  ;;  %v1196_v31 = vpop.permute.xlu0 %1195 }
 0x174   : > { %1083 = vst.msk [vmem:[#allocation3 + $0x80] sm:$0xff] %vm1066_vm5, %v1003_v19 }
 0x175   : > { %1207 = vrot.lane.b32.xlu1 %v1121_v26, %s2928_s30  ;;  %1276 = vst.msk [vmem:[#allocation3 + $0x80] sm:$0xff] %vm1259_vm6, %v1196_v31  ;;  %1177 = vrot.lane.b32.xlu0 %v1106_v38, %s2928_s30 }
 0x177   : > { %v1164_v23 = vpop.permute.xlu1 %1163  ;;  %v1198_v11 = vpop.permute.xlu0 %1197 }
 0x178   : > { %1260 = vst.msk [vmem:[#allocation3] sm:$0xff] %vm1259_vm6, %v1164_v23  ;;  %1277 = vst.msk [vmem:[#allocation3 + $0x88] sm:$0xff] %vm1259_vm6, %v1198_v11  ;;  %v1704_v23 = vld [vmem:[#allocation2 + $0x15a] sm:$0xff] }
 0x179   : > { %1785 = vrot.lane.b32.xlu1 %v1700_v45, %s2931_s7  ;;  %1369 = vrot.lane.b32.xlu0 %v3180_v58, %s2929_s3 }
 0x17b   : > { %v1166_v50 = vpop.permute.xlu1 %1165  ;;  %v1390_v24 = vpop.permute.xlu0 %1389 }
 0x17c   : > { %1261 = vst.msk [vmem:[#allocation3 + $0x8] sm:$0xff] %vm1259_vm6, %v1166_v50  ;;  %v1303_v50 = vld [vmem:[#allocation2 + $0xa8] sm:$0xff] }
 0x17d   : > { %1209 = vrot.lane.b32.xlu1 %v1700_v45, %s2928_s30  ;;  %1470 = vst.msk [vmem:[#allocation3 + $0x80] sm:$0xff] %vm1453_vm7, %v1390_v24  ;;  %1371 = vrot.lane.b32.xlu0 %v3193_v61, %s2929_s3  ;;  %v1508_v61 = vld [vmem:[#allocation2 + $0x139] sm:$0xff] }
 0x17f   : > { %v1358_v20 = vpop.permute.xlu1 %1357  ;;  %v1392_v60 = vpop.permute.xlu0 %1391 }
 0x180   : > { %1454 = vst.msk [vmem:[#allocation3] sm:$0xff] %vm1453_vm7, %v1358_v20  ;;  %1471 = vst.msk [vmem:[#allocation3 + $0x88] sm:$0xff] %vm1453_vm7, %v1392_v60  ;;  %v1304_v60 = vld [vmem:[#allocation2 + $0xb0] sm:$0xff] }
 0x181   : > { %1401 = vrot.lane.b32.xlu1 %v3252_v12, %s2929_s3  ;;  %1562 = vrot.lane.b32.xlu0 %v1492_v17, %s2930_s21 }
 0x183   : > { %v1360_v58 = vpop.permute.xlu1 %1359  ;;  %v1583_v28 = vpop.permute.xlu0 %1582 }
 0x184   : > { %1455 = vst.msk [vmem:[#allocation3 + $0x8] sm:$0xff] %vm1453_vm7, %v1360_v58 }
 0x185   : > { %1403 = vrot.lane.b32.xlu1 %v3277_v18, %s2929_s3  ;;  %1663 = vst.msk [vmem:[#allocation3 + $0x80] sm:$0xff] %vm1646_vm8, %v1583_v28  ;;  %986 = vrot.lane.b32.xlu0 %v1492_v17, %s2927_s29  ;;  %v1319_v28 = vld [vmem:[#allocation2 + $0x168] sm:$0xff] }
 0x187   : > { %v1551_v62 = vpop.permute.xlu1 %1550  ;;  %v1553_v12 = vpop.permute.xlu0 %1552 }
 0x188   : > { %1647 = vst.msk [vmem:[#allocation3] sm:$0xff] %vm1646_vm8, %v1551_v62  ;;  %1648 = vst.msk [vmem:[#allocation3 + $0x8] sm:$0xff] %vm1646_vm8, %v1553_v12  ;;  %v1496_v62 = vld [vmem:[#allocation2 + $0xa9] sm:$0xff] }
 0x189   : > { %1594 = vrot.lane.b32.xlu1 %v1508_v61, %s2930_s21  ;;  %1564 = vrot.lane.b32.xlu0 %v1493_v34, %s2930_s21  ;;  %v1320_v12 = vld [vmem:[#allocation2 + $0x170] sm:$0xff] }
 0x18b   : > { %v1007_v41 = vpop.permute.xlu1 %1006  ;;  %v1744_v18 = vpop.permute.xlu0 %1743 }
 0x18c   : > { %1085 = vst.msk [vmem:[#allocation3 + $0x90] sm:$0xff] %vm1066_vm5, %v1007_v41 }
 0x18d   : > { %1018 = vrot.lane.b32.xlu1 %v1508_v61, %s2927_s29  ;;  %1840 = vst.msk [vmem:[#allocation3] sm:$0xff] %vm1839_vm9, %v1744_v18  ;;  %1755 = vrot.lane.b32.xlu0 %v1685_v29, %s2931_s7  ;;  %v1512_v18 = vld [vmem:[#allocation2 + $0x169] sm:$0xff] }
 0x18f   : > { %v1585_v37 = vpop.permute.xlu1 %1584  ;;  %v1009_v44 = vpop.permute.xlu0 %1008 }
 0x190   : > { %1664 = vst.msk [vmem:[#allocation3 + $0x88] sm:$0xff] %vm1646_vm8, %v1585_v37  ;;  %v1497_v37 = vld [vmem:[#allocation2 + $0xb1] sm:$0xff] }
 0x191   : > { %1596 = vrot.lane.b32.xlu1 %v1509_v25, %s2930_s21  ;;  %1086 = vst.msk [vmem:[#allocation3 + $0x98] sm:$0xff] %vm1066_vm5, %v1009_v44  ;;  %988 = vrot.lane.b32.xlu0 %v1493_v34, %s2927_s29 }
 0x193   : > { %v1776_v0 = vpop.permute.xlu1 %1775  ;;  %v1200_v52 = vpop.permute.xlu0 %1199 }
 0x194   : > { %1856 = vst.msk [vmem:[#allocation3 + $0x80] sm:$0xff] %vm1839_vm9, %v1776_v0  ;;  %v1872_v1 = vld [vmem:[#allocation3] sm:$0xff] }
 0x195   : > { %1787 = vrot.lane.b32.xlu1 %v1701_v7, %s2931_s7  ;;  %1278 = vst.msk [vmem:[#allocation3 + $0x90] sm:$0xff] %vm1259_vm6, %v1200_v52  ;;  %2736 = vmatprep.mubr.msk.f32.mxu0 %vm1913_vm10, %v1872_v1  ;;  %v1689_v0 = vld [vmem:[#allocation2 + $0xaa] sm:$0xff] }
 0x196   : > { %1179 = vrot.lane.b32.xlu0 %v1685_v29, %s2928_s30  ;;  %v1513_v1 = vld [vmem:[#allocation2 + $0x171] sm:$0xff] }
 0x197   : > { %v1168_v10 = vpop.permute.xlu1 %1167  ;;  %v1778_v27 = vpop.permute.xlu0 %1777 }
 0x198   : > { %1262 = vst.msk [vmem:[#allocation3 + $0x10] sm:$0xff] %vm1259_vm6, %v1168_v10 }
 0x199   : > { %1020 = vrot.lane.b32.xlu1 %v1509_v25, %s2927_s29  ;;  %1857 = vst.msk [vmem:[#allocation3 + $0x88] sm:$0xff] %vm1839_vm9, %v1778_v27 }
 0x19a   : > { %1757 = vrot.lane.b32.xlu0 %v1686_v57, %s2931_s7 }
 0x19b   : > { %v1746_v30 = vpop.permute.xlu1 %1745  ;;  %v1888_v2 = vld [vmem:[#allocation3 + $0x80] sm:$0xff]  ;;  %v1202_v15 = vpop.permute.xlu0 %1201 }
 0x19c   : > { %1841 = vst.msk [vmem:[#allocation3 + $0x8] sm:$0xff] %vm1839_vm9, %v1746_v30  ;;  %2760 = vmatprep.mubr.msk.f32.mxu1 %vm1913_vm10, %v1888_v2  ;;  %v1705_v30 = vld [vmem:[#allocation2 + $0x16a] sm:$0xff] }
 0x19d   : > { %1211 = vrot.lane.b32.xlu1 %v1701_v7, %s2928_s30  ;;  %1279 = vst.msk [vmem:[#allocation3 + $0x98] sm:$0xff] %vm1259_vm6, %v1202_v15 }
 0x19e   : > { %1181 = vrot.lane.b32.xlu0 %v1686_v57, %s2928_s30 }
 0x19f   : > { %v1170_v56 = vpop.permute.xlu1 %1169  ;;  %v1394_v32 = vpop.permute.xlu0 %1393 }
 0x1a0   : > { %1263 = vst.msk [vmem:[#allocation3 + $0x18] sm:$0xff] %vm1259_vm6, %v1170_v56  ;;  %v1889_v39 = vld [vmem:[#allocation3 + $0x88] sm:$0xff] }
 0x1a1   : > { %1789 = vrot.lane.b32.xlu1 %v1702_v13, %s2931_s7  ;;  %1472 = vst.msk [vmem:[#allocation3 + $0x90] sm:$0xff] %vm1453_vm7, %v1394_v32  ;;  %2761 = vmatmul.mubr.msk.f32.vlgmr.msra.gmra.mrb[0].mxu1 %vm1913_vm10, %v1889_v39 }
 0x1a2   : > { %1373 = vrot.lane.b32.xlu0 %v1301_v21, %s2929_s3  ;;  %v1690_v21 = vld [vmem:[#allocation2 + $0xb2] sm:$0xff] }
 0x1a3   : > { %v1362_v43 = vpop.permute.xlu1 %1361  ;;  %v1873_v35 = vld [vmem:[#allocation3 + $0x8] sm:$0xff]  ;;  %v1396_v36 = vpop.permute.xlu0 %1395 }
 0x1a4   : > { %1456 = vst.msk [vmem:[#allocation3 + $0x10] sm:$0xff] %vm1453_vm7, %v1362_v43  ;;  %2737 = vmatmul.mubr.msk.f32.vlgmr.msra.gmra.mrb[0].mxu0 %vm1913_vm10, %v1873_v35  ;;  %1473 = vst.msk [vmem:[#allocation3 + $0x98] sm:$0xff] %vm1453_vm7, %v1396_v36 }
 0x1a5   : > { %1213 = vrot.lane.b32.xlu1 %v1702_v13, %s2928_s30 }
 0x1a6   : > { %1375 = vrot.lane.b32.xlu0 %v1302_v42, %s2929_s3  ;;  %v1706_v42 = vld [vmem:[#allocation2 + $0x172] sm:$0xff] }
 0x1a7   : > { %v1364_v46 = vpop.permute.xlu1 %1363  ;;  %v1587_v5 = vpop.permute.xlu0 %1586 }
 0x1a8   : > { %1457 = vst.msk [vmem:[#allocation3 + $0x18] sm:$0xff] %vm1453_vm7, %v1364_v46  ;;  %v1305_v46 = vld [vmem:[#allocation2 + $0xc0] sm:$0xff] }
 0x1a9   : > { %1405 = vrot.lane.b32.xlu1 %v3267_v16, %s2929_s3  ;;  %1665 = vst.msk [vmem:[#allocation3 + $0x90] sm:$0xff] %vm1646_vm8, %v1587_v5 }
 0x1aa   : > { %1566 = vrot.lane.b32.xlu0 %v1494_v3, %s2930_s21 }
 0x1ab   : > { %v1555_v55 = vpop.permute.xlu1 %1554  ;;  %v1557_v40 = vpop.permute.xlu0 %1556 }
 0x1ac   : > { %1649 = vst.msk [vmem:[#allocation3 + $0x10] sm:$0xff] %vm1646_vm8, %v1555_v55  ;;  %1650 = vst.msk [vmem:[#allocation3 + $0x18] sm:$0xff] %vm1646_vm8, %v1557_v40  ;;  %v1306_v40 = vld [vmem:[#allocation2 + $0xc8] sm:$0xff] }
 0x1ad   : > { %1407 = vrot.lane.b32.xlu1 %v3290_v22, %s2929_s3 }
 0x1ae   : > { %990 = vrot.lane.b32.xlu0 %v1494_v3, %s2927_s29 }
 0x1af   : > { %v1011_v49 = vpop.permute.xlu1 %1010  ;;  %v1748_v16 = vpop.permute.xlu0 %1747 }
 0x1b0   : > { %1087 = vst.msk [vmem:[#allocation3 + $0xa0] sm:$0xff] %vm1066_vm5, %v1011_v49  ;;  %v1321_v49 = vld [vmem:[#allocation2 + $0x180] sm:$0xff] }
 0x1b1   : > { %1598 = vrot.lane.b32.xlu1 %v1510_v59, %s2930_s21  ;;  %1842 = vst.msk [vmem:[#allocation3 + $0x10] sm:$0xff] %vm1839_vm9, %v1748_v16  ;;  %v1498_v16 = vld [vmem:[#allocation2 + $0xc1] sm:$0xff] }
 0x1b2   : > { %1568 = vrot.lane.b32.xlu0 %v1495_v9, %s2930_s21 }
 0x1b3   : > { %v1589_v4 = vpop.permute.xlu1 %1588  ;;  %v981_v22 = vpop.permute.xlu0 %980 }
 0x1b4   : > { %1666 = vst.msk [vmem:[#allocation3 + $0x98] sm:$0xff] %vm1646_vm8, %v1589_v4 }
 0x1b5   : > { %1022 = vrot.lane.b32.xlu1 %v1510_v59, %s2927_s29  ;;  %1072 = vst.msk [vmem:[#allocation3 + $0x28] sm:$0xff] %vm1066_vm5, %v981_v22 }
 0x1b6   : > { %1759 = vrot.lane.b32.xlu0 %v1687_v48, %s2931_s7 }
 0x1b7   : > { %v1780_v8 = vpop.permute.xlu1 %1779  ;;  %v1172_v6 = vpop.permute.xlu0 %1171 }
 0x1b8   : > { %1858 = vst.msk [vmem:[#allocation3 + $0x90] sm:$0xff] %vm1839_vm9, %v1780_v8  ;;  %v1874_v54 = vld [vmem:[#allocation3 + $0x10] sm:$0xff] }
 0x1b9   : > { %1600 = vrot.lane.b32.xlu1 %v1511_v14, %s2930_s21  ;;  %1264 = vst.msk [vmem:[#allocation3 + $0x20] sm:$0xff] %vm1259_vm6, %v1172_v6  ;;  %2739 = vmatprep.mubr.msk.f32.mxu0 %vm1913_vm10, %v1874_v54  ;;  %v1514_v8 = vld [vmem:[#allocation2 + $0x181] sm:$0xff]  ;;  %v1499_v54 = vld [vmem:[#allocation2 + $0xc9] sm:$0xff] }
 0x1ba   : > { %992 = vrot.lane.b32.xlu0 %v1495_v9, %s2927_s29 }
 0x1bb   : > { %v1013_v53 = vpop.permute.xlu1 %1012  ;;  %v1750_v51 = vpop.permute.xlu0 %1749 }
 0x1bc   : > { %1088 = vst.msk [vmem:[#allocation3 + $0xa8] sm:$0xff] %vm1066_vm5, %v1013_v53 }
 0x1bd   : > { %1791 = vrot.lane.b32.xlu1 %v1703_v33, %s2931_s7  ;;  %1843 = vst.msk [vmem:[#allocation3 + $0x18] sm:$0xff] %vm1839_vm9, %v1750_v51  ;;  %v1691_v51 = vld [vmem:[#allocation2 + $0xc2] sm:$0xff] }
 0x1be   : > { %1183 = vrot.lane.b32.xlu0 %v1687_v48, %s2928_s30  ;;  %v1322_v48 = vld [vmem:[#allocation2 + $0x188] sm:$0xff] }
 0x1bf   : > { %v1204_v47 = vpop.permute.xlu1 %1203  ;;  %v1890_v26 = vld [vmem:[#allocation3 + $0x90] sm:$0xff]  ;;  %v1174_v19 = vpop.permute.xlu0 %1173 }
 0x1c0   : > { %1280 = vst.msk [vmem:[#allocation3 + $0xa0] sm:$0xff] %vm1259_vm6, %v1204_v47  ;;  %2763 = vmatprep.mubr.msk.f32.mxu1 %vm1913_vm10, %v1890_v26  ;;  %1265 = vst.msk [vmem:[#allocation3 + $0x28] sm:$0xff] %vm1259_vm6, %v1174_v19  ;;  %v1515_v26 = vld [vmem:[#allocation2 + $0x189] sm:$0xff] }
 0x1c1   : > { %1024 = vrot.lane.b32.xlu1 %v1511_v14, %s2927_s29 }
 0x1c2   : > { %1761 = vrot.lane.b32.xlu0 %v1688_v63, %s2931_s7 }
 0x1c3   : > { %v1782_v38 = vpop.permute.xlu1 %1781  ;;  %v1366_v31 = vpop.permute.xlu0 %1365 }
 0x1c4   : > { %1859 = vst.msk [vmem:[#allocation3 + $0x98] sm:$0xff] %vm1839_vm9, %v1782_v38  ;;  %v1875_v45 = vld [vmem:[#allocation3 + $0x18] sm:$0xff] }
 0x1c5   : > { %1215 = vrot.lane.b32.xlu1 %v1703_v33, %s2928_s30  ;;  %1458 = vst.msk [vmem:[#allocation3 + $0x20] sm:$0xff] %vm1453_vm7, %v1366_v31  ;;  %2740 = vmatmul.mubr.msk.f32.gmra.mrb[2].mxu0 %vm1913_vm10, %v1875_v45  ;;  %v1707_v31 = vld [vmem:[#allocation2 + $0x182] sm:$0xff] }
 0x1c6   : > { %1185 = vrot.lane.b32.xlu0 %v1688_v63, %s2928_s30 }
 0x1c7   : > { %v1206_v11 = vpop.permute.xlu1 %1205  ;;  %v1368_v24 = vpop.permute.xlu0 %1367 }
 0x1c8   : > { %1281 = vst.msk [vmem:[#allocation3 + $0xa8] sm:$0xff] %vm1259_vm6, %v1206_v11 }
 0x1c9   : > { %1793 = vrot.lane.b32.xlu1 %v1704_v23, %s2931_s7  ;;  %1459 = vst.msk [vmem:[#allocation3 + $0x28] sm:$0xff] %vm1453_vm7, %v1368_v24  ;;  %v1692_v24 = vld [vmem:[#allocation2 + $0xca] sm:$0xff] }
 0x1ca   : > { %1377 = vrot.lane.b32.xlu0 %v1303_v50, %s2929_s3 }
 0x1cb   : > { %v1398_v20 = vpop.permute.xlu1 %1397  ;;  %v1891_v17 = vld [vmem:[#allocation3 + $0x98] sm:$0xff]  ;;  %v1559_v58 = vpop.permute.xlu0 %1558 }
 0x1cc   : > { %1474 = vst.msk [vmem:[#allocation3 + $0xa0] sm:$0xff] %vm1453_vm7, %v1398_v20  ;;  %2764 = vmatmul.mubr.msk.f32.gmra.mrb[2].mxu1 %vm1913_vm10, %v1891_v17 }
 0x1cd   : > { %1217 = vrot.lane.b32.xlu1 %v1704_v23, %s2928_s30  ;;  %1651 = vst.msk [vmem:[#allocation3 + $0x20] sm:$0xff] %vm1646_vm8, %v1559_v58 }
 0x1ce   : > { %1379 = vrot.lane.b32.xlu0 %v1304_v60, %s2929_s3 }
 0x1cf   : > { %v1400_v61 = vpop.permute.xlu1 %1399  ;;  %v983_v34 = vpop.permute.xlu0 %982 }
 0x1d0   : > { %1475 = vst.msk [vmem:[#allocation3 + $0xa8] sm:$0xff] %vm1453_vm7, %v1400_v61 }
 0x1d1   : > { %1409 = vrot.lane.b32.xlu1 %v1319_v28, %s2929_s3  ;;  %1073 = vst.msk [vmem:[#allocation3 + $0x30] sm:$0xff] %vm1066_vm5, %v983_v34  ;;  %v1708_v28 = vld [vmem:[#allocation2 + $0x18a] sm:$0xff] }
 0x1d2   : > { %1570 = vrot.lane.b32.xlu0 %v1496_v62, %s2930_s21 }
 0x1d3   : > { %v1591_v41 = vpop.permute.xlu1 %1590  ;;  %v1561_v29 = vpop.permute.xlu0 %1560 }
 0x1d4   : > { %1667 = vst.msk [vmem:[#allocation3 + $0xa0] sm:$0xff] %vm1646_vm8, %v1591_v41  ;;  %1652 = vst.msk [vmem:[#allocation3 + $0x28] sm:$0xff] %vm1646_vm8, %v1561_v29  ;;  %v1308_v29 = vld [vmem:[#allocation2 + $0xe0] sm:$0xff] }
 0x1d5   : > { %1411 = vrot.lane.b32.xlu1 %v1320_v12, %s2929_s3 }
 0x1d6   : > { %994 = vrot.lane.b32.xlu0 %v1496_v62, %s2927_s29  ;;  %v1307_v62 = vld [vmem:[#allocation2 + $0xd8] sm:$0xff] }
 0x1d7   : > { %v1015_v25 = vpop.permute.xlu1 %1014  ;;  %v1752_v44 = vpop.permute.xlu0 %1751 }
 0x1d8   : > { %1089 = vst.msk [vmem:[#allocation3 + $0xb0] sm:$0xff] %vm1066_vm5, %v1015_v25  ;;  %v1323_v25 = vld [vmem:[#allocation2 + $0x198] sm:$0xff] }
 0x1d9   : > { %1602 = vrot.lane.b32.xlu1 %v1512_v18, %s2930_s21  ;;  %1844 = vst.msk [vmem:[#allocation3 + $0x20] sm:$0xff] %vm1839_vm9, %v1752_v44  ;;  %v1500_v44 = vld [vmem:[#allocation2 + $0xd9] sm:$0xff] }
 0x1da   : > { %1572 = vrot.lane.b32.xlu0 %v1497_v37, %s2930_s21 }
 0x1db   : > { %v1593_v7 = vpop.permute.xlu1 %1592  ;;  %v985_v52 = vpop.permute.xlu0 %984 }
 0x1dc   : > { %1668 = vst.msk [vmem:[#allocation3 + $0xa8] sm:$0xff] %vm1646_vm8, %v1593_v7 }
 0x1dd   : > { %1026 = vrot.lane.b32.xlu1 %v1512_v18, %s2927_s29  ;;  %1074 = vst.msk [vmem:[#allocation3 + $0x38] sm:$0xff] %vm1066_vm5, %v985_v52 }
 0x1de   : > { %1763 = vrot.lane.b32.xlu0 %v1689_v0, %s2931_s7 }
 0x1df   : > { %v1784_v10 = vpop.permute.xlu1 %1783  ;;  %v1176_v57 = vpop.permute.xlu0 %1175 }
 0x1e0   : > { %1860 = vst.msk [vmem:[#allocation3 + $0xa0] sm:$0xff] %vm1839_vm9, %v1784_v10  ;;  %v1876_v27 = vld [vmem:[#allocation3 + $0x20] sm:$0xff] }
 0x1e1   : > { %1604 = vrot.lane.b32.xlu1 %v1513_v1, %s2930_s21  ;;  %1266 = vst.msk [vmem:[#allocation3 + $0x30] sm:$0xff] %vm1259_vm6, %v1176_v57  ;;  %2742 = vmatprep.mubr.msk.f32.mxu0 %vm1913_vm10, %v1876_v27  ;;  %v1516_v57 = vld [vmem:[#allocation2 + $0x199] sm:$0xff] }
 0x1e2   : > { %996 = vrot.lane.b32.xlu0 %v1497_v37, %s2927_s29 }
 0x1e3   : > { %v1017_v2 = vpop.permute.xlu1 %1016  ;;  %v1754_v15 = vpop.permute.xlu0 %1753 }
 0x1e4   : > { %1090 = vst.msk [vmem:[#allocation3 + $0xb8] sm:$0xff] %vm1066_vm5, %v1017_v2 }
 0x1e5   : > { %1795 = vrot.lane.b32.xlu1 %v1705_v30, %s2931_s7  ;;  %1845 = vst.msk [vmem:[#allocation3 + $0x28] sm:$0xff] %vm1839_vm9, %v1754_v15  ;;  %v1517_v15 = vld [vmem:[#allocation2 + $0x1a1] sm:$0xff] }
 0x1e6   : > { %1187 = vrot.lane.b32.xlu0 %v1689_v0, %s2928_s30  ;;  %v1324_v0 = vld [vmem:[#allocation2 + $0x1a0] sm:$0xff] }
 0x1e7   : > { %v1208_v13 = vpop.permute.xlu1 %1207  ;;  %v1892_v56 = vld [vmem:[#allocation3 + $0xa0] sm:$0xff]  ;;  %v1178_v32 = vpop.permute.xlu0 %1177 }
 0x1e8   : > { %1282 = vst.msk [vmem:[#allocation3 + $0xb0] sm:$0xff] %vm1259_vm6, %v1208_v13  ;;  %2766 = vmatprep.mubr.msk.f32.mxu1 %vm1913_vm10, %v1892_v56  ;;  %1267 = vst.msk [vmem:[#allocation3 + $0x38] sm:$0xff] %vm1259_vm6, %v1178_v32  ;;  %v1694_v56 = vld [vmem:[#allocation2 + $0xe2] sm:$0xff]  ;;  %v1709_v32 = vld [vmem:[#allocation2 + $0x19a] sm:$0xff] }
 0x1e9   : > { %1028 = vrot.lane.b32.xlu1 %v1513_v1, %s2927_s29  ;;  %v1501_v1 = vld [vmem:[#allocation2 + $0xe1] sm:$0xff] }
 0x1ea   : > { %1765 = vrot.lane.b32.xlu0 %v1690_v21, %s2931_s7 }
 0x1eb   : > { %v1786_v39 = vpop.permute.xlu1 %1785  ;;  %v1370_v43 = vpop.permute.xlu0 %1369 }
 0x1ec   : > { %1861 = vst.msk [vmem:[#allocation3 + $0xa8] sm:$0xff] %vm1839_vm9, %v1786_v39  ;;  %v1877_v35 = vld [vmem:[#allocation3 + $0x28] sm:$0xff] }
 0x1ed   : > { %1219 = vrot.lane.b32.xlu1 %v1705_v30, %s2928_s30  ;;  %1460 = vst.msk [vmem:[#allocation3 + $0x30] sm:$0xff] %vm1453_vm7, %v1370_v43  ;;  %2743 = vmatmul.mubr.msk.f32.gmra.mrb[4].mxu0 %vm1913_vm10, %v1877_v35  ;;  %v1693_v30 = vld [vmem:[#allocation2 + $0xda] sm:$0xff] }
 0x1ee   : > { %1189 = vrot.lane.b32.xlu0 %v1690_v21, %s2928_s30 }
 0x1ef   : > { %v1210_v36 = vpop.permute.xlu1 %1209  ;;  %v1372_v3 = vpop.permute.xlu0 %1371 }
 0x1f0   : > { %1283 = vst.msk [vmem:[#allocation3 + $0xb8] sm:$0xff] %vm1259_vm6, %v1210_v36 }
 0x1f1   : > { %1797 = vrot.lane.b32.xlu1 %v1706_v42, %s2931_s7  ;;  %1461 = vst.msk [vmem:[#allocation3 + $0x38] sm:$0xff] %vm1453_vm7, %v1372_v3 }
 0x1f2   : > { %1381 = vrot.lane.b32.xlu0 %v1305_v46, %s2929_s3 }
 0x1f3   : > { %v1402_v5 = vpop.permute.xlu1 %1401  ;;  %v1893_v55 = vld [vmem:[#allocation3 + $0xa8] sm:$0xff]  ;;  %v1563_v59 = vpop.permute.xlu0 %1562 }
 0x1f4   : > { %1476 = vst.msk [vmem:[#allocation3 + $0xb0] sm:$0xff] %vm1453_vm7, %v1402_v5  ;;  %2767 = vmatmul.mubr.msk.f32.gmra.mrb[4].mxu1 %vm1913_vm10, %v1893_v55 }
 0x1f5   : > { %1221 = vrot.lane.b32.xlu1 %v1706_v42, %s2928_s30  ;;  %1653 = vst.msk [vmem:[#allocation3 + $0x30] sm:$0xff] %vm1646_vm8, %v1563_v59  ;;  %v1710_v42 = vld [vmem:[#allocation2 + $0x1a2] sm:$0xff] }
 0x1f6   : > { %1383 = vrot.lane.b32.xlu0 %v1306_v40, %s2929_s3 }
 0x1f7   : > { %v1404_v9 = vpop.permute.xlu1 %1403  ;;  %v987_v4 = vpop.permute.xlu0 %986 }
 0x1f8   : > { %1477 = vst.msk [vmem:[#allocation3 + $0xb8] sm:$0xff] %vm1453_vm7, %v1404_v9 }
 0x1f9   : > { %1413 = vrot.lane.b32.xlu1 %v1321_v49, %s2929_s3  ;;  %1075 = vst.msk [vmem:[#allocation3 + $0x40] sm:$0xff] %vm1066_vm5, %v987_v4 }
 0x1fa   : > { %1574 = vrot.lane.b32.xlu0 %v1498_v16, %s2930_s21 }
 0x1fb   : > { %v1595_v22 = vpop.permute.xlu1 %1594  ;;  %v1565_v14 = vpop.permute.xlu0 %1564 }
 0x1fc   : > { %1669 = vst.msk [vmem:[#allocation3 + $0xb0] sm:$0xff] %vm1646_vm8, %v1595_v22  ;;  %1654 = vst.msk [vmem:[#allocation3 + $0x38] sm:$0xff] %vm1646_vm8, %v1565_v14 }
 0x1fd   : > { %1415 = vrot.lane.b32.xlu1 %v1322_v48, %s2929_s3 }
 0x1fe   : > { %998 = vrot.lane.b32.xlu0 %v1498_v16, %s2927_s29 }
 0x1ff   : > { %v1019_v6 = vpop.permute.xlu1 %1018  ;;  %v1756_v33 = vpop.permute.xlu0 %1755 }
 0x200   : > { %1091 = vst.msk [vmem:[#allocation3 + $0xc0] sm:$0xff] %vm1066_vm5, %v1019_v6 }
 0x201   : > { %1606 = vrot.lane.b32.xlu1 %v1514_v8, %s2930_s21  ;;  %1846 = vst.msk [vmem:[#allocation3 + $0x30] sm:$0xff] %vm1839_vm9, %v1756_v33 }
 0x202   : > { %1576 = vrot.lane.b32.xlu0 %v1499_v54, %s2930_s21 }
 0x203   : > { %v1597_v53 = vpop.permute.xlu1 %1596  ;;  %v989_v47 = vpop.permute.xlu0 %988 }
 0x204   : > { %1670 = vst.msk [vmem:[#allocation3 + $0xb8] sm:$0xff] %vm1646_vm8, %v1597_v53 }
 0x205   : > { %1030 = vrot.lane.b32.xlu1 %v1514_v8, %s2927_s29  ;;  %1076 = vst.msk [vmem:[#allocation3 + $0x48] sm:$0xff] %vm1066_vm5, %v989_v47 }
 0x206   : > { %1767 = vrot.lane.b32.xlu0 %v1691_v51, %s2931_s7 }
 0x207   : > { %v1788_v63 = vpop.permute.xlu1 %1787 }
 0x208   : > { %1862 = vst.msk [vmem:[#allocation3 + $0xb0] sm:$0xff] %vm1839_vm9, %v1788_v63  ;;  %v1180_v19 = vpop.permute.xlu0 %1179  ;;  %v1878_v38 = vld [vmem:[#allocation3 + $0x30] sm:$0xff] }
 0x209   : > { %1608 = vrot.lane.b32.xlu1 %v1515_v26, %s2930_s21  ;;  %1268 = vst.msk [vmem:[#allocation3 + $0x40] sm:$0xff] %vm1259_vm6, %v1180_v19  ;;  %2745 = vmatprep.mubr.msk.f32.mxu0 %vm1913_vm10, %v1878_v38 }
 0x20a   : > { %1000 = vrot.lane.b32.xlu0 %v1499_v54, %s2927_s29 }
 0x20b   : > { %v1021_v45 = vpop.permute.xlu1 %1020 }
 0x20c   : > { %1092 = vst.msk [vmem:[#allocation3 + $0xc8] sm:$0xff] %vm1066_vm5, %v1021_v45  ;;  %v1758_v23 = vpop.permute.xlu0 %1757 }
 0x20d   : > { %1799 = vrot.lane.b32.xlu1 %v1707_v31, %s2931_s7  ;;  %1847 = vst.msk [vmem:[#allocation3 + $0x38] sm:$0xff] %vm1839_vm9, %v1758_v23 }
 0x20e   : > { %1191 = vrot.lane.b32.xlu0 %v1691_v51, %s2928_s30 }
 0x20f   : > { %v1212_v11 = vpop.permute.xlu1 %1211  ;;  %v1894_v50 = vld [vmem:[#allocation3 + $0xb0] sm:$0xff] }
 0x210   : > { %1284 = vst.msk [vmem:[#allocation3 + $0xc0] sm:$0xff] %vm1259_vm6, %v1212_v11  ;;  %2769 = vmatprep.mubr.msk.f32.mxu1 %vm1913_vm10, %v1894_v50  ;;  %v1182_v20 = vpop.permute.xlu0 %1181 }
 0x211   : > { %1032 = vrot.lane.b32.xlu1 %v1515_v26, %s2927_s29  ;;  %1269 = vst.msk [vmem:[#allocation3 + $0x48] sm:$0xff] %vm1259_vm6, %v1182_v20  ;;  %s134_s29 = sand.u32 1, %s2913_s10  }
 0x212   : > { %1769 = vrot.lane.b32.xlu0 %v1692_v24, %s2931_s7 }
 0x213   : > { %v1790_v17 = vpop.permute.xlu1 %1789 }
 0x214   : > { %1863 = vst.msk [vmem:[#allocation3 + $0xb8] sm:$0xff] %vm1839_vm9, %v1790_v17  ;;  %v1374_v60 = vpop.permute.xlu0 %1373  ;;  %v1879_v58 = vld [vmem:[#allocation3 + $0x38] sm:$0xff] }
 0x215   : > { %1223 = vrot.lane.b32.xlu1 %v1707_v31, %s2928_s30  ;;  %1462 = vst.msk [vmem:[#allocation3 + $0x40] sm:$0xff] %vm1453_vm7, %v1374_v60  ;;  %2746 = vmatmul.mubr.msk.f32.gmra.mrb[6].mxu0 %vm1913_vm10, %v1879_v58 }
 0x216   : > { %1193 = vrot.lane.b32.xlu0 %v1692_v24, %s2928_s30 }
 0x217   : > { %v1214_v61 = vpop.permute.xlu1 %1213 }
 0x218   : > { %1285 = vst.msk [vmem:[#allocation3 + $0xc8] sm:$0xff] %vm1259_vm6, %v1214_v61  ;;  %v1376_v34 = vpop.permute.xlu0 %1375 }
 0x219   : > { %1801 = vrot.lane.b32.xlu1 %v1708_v28, %s2931_s7  ;;  %1463 = vst.msk [vmem:[#allocation3 + $0x48] sm:$0xff] %vm1453_vm7, %v1376_v34 }
 0x21a   : > { %1385 = vrot.lane.b32.xlu0 %v1307_v62, %s2929_s3  ;;  %v2331_v62 = vld [vmem:[%s3058_s25] sm:$0xff] }
 0x21b   : > { %v1406_v12 = vpop.permute.xlu1 %1405  ;;  %v1895_v41 = vld [vmem:[#allocation3 + $0xb8] sm:$0xff] }
 0x21c   : > { %1478 = vst.msk [vmem:[#allocation3 + $0xc0] sm:$0xff] %vm1453_vm7, %v1406_v12  ;;  %2770 = vmatmul.mubr.msk.f32.gmra.mrb[6].mxu1 %vm1913_vm10, %v1895_v41  ;;  %v1567_v18 = vpop.permute.xlu0 %1566  ;;  %v2332_v12 = vld [vmem:[%s3058_s25 + $0x8] sm:$0xff] }
 0x21d   : > { %1225 = vrot.lane.b32.xlu1 %v1708_v28, %s2928_s30  ;;  %1655 = vst.msk [vmem:[#allocation3 + $0x40] sm:$0xff] %vm1646_vm8, %v1567_v18  ;;  %s2635_s30 = sshll.u32 %s134_s29, 8 }
 0x21e   : > { %1387 = vrot.lane.b32.xlu0 %v1308_v29, %s2929_s3  ;;  %v2334_v29 = vld [vmem:[%s3058_s25 + $0x18] sm:$0xff] }
 0x21f   : > { %v1408_v37 = vpop.permute.xlu1 %1407 }
 0x220   : > { %1479 = vst.msk [vmem:[#allocation3 + $0xc8] sm:$0xff] %vm1453_vm7, %v1408_v37  ;;  %v991_v7 = vpop.permute.xlu0 %990 }
 0x221   : > { %1417 = vrot.lane.b32.xlu1 %v1323_v25, %s2929_s3  ;;  %1077 = vst.msk [vmem:[#allocation3 + $0x50] sm:$0xff] %vm1066_vm5, %v991_v7 }
 0x222   : > { %1578 = vrot.lane.b32.xlu0 %v1500_v44, %s2930_s21 }
 0x223   : > { %v1599_v52 = vpop.permute.xlu1 %1598 }
 0x224   : > { %1671 = vst.msk [vmem:[#allocation3 + $0xc0] sm:$0xff] %vm1646_vm8, %v1599_v52  ;;  %v1569_v10 = vpop.permute.xlu0 %1568 }
 0x225   : > { %1419 = vrot.lane.b32.xlu1 %v1324_v0, %s2929_s3  ;;  %1656 = vst.msk [vmem:[#allocation3 + $0x48] sm:$0xff] %vm1646_vm8, %v1569_v10  ;;  %s3953_s3 = scalar_lea.vmem [#allocation4], %s2635_s30 }
 0x226   : > { %1580 = vrot.lane.b32.xlu0 %v1501_v1, %s2930_s21  ;;  %2363 = vst.msk [vmem:[%s3953_s3] sm:$0xff] %vm142_vm0, %v2331_v62  ;;  %2364 = vst.msk [vmem:[%s3953_s3 + $0x8] sm:$0xff] %vm142_vm0, %v2332_v12  ;;  %s2569_s16 = sshll.u32 %s3953_s3, 4  ;;  %s4263_s16 = int_to_ptr.vmem [resolvable:$true] %s2569_s16 }
 0x227   : > { %v1023_v27 = vpop.permute.xlu1 %1022  ;;  %2366 = vst.msk [vmem:[%s3953_s3 + $0x18] sm:$0xff] %vm142_vm0, %v2334_v29  ;;  %s2859_s23 = scalar_lea.vmem %s4263_s16, 4096  ;;  %p2866_p0 = scmp.lt.s32.totalorder %s4263_s16, %s2864_s27 }
 0x228   : > { %1093 = vst.msk [vmem:[#allocation3 + $0xd0] sm:$0xff] %vm1066_vm5, %v1023_v27  ;;  %v1760_v2 = vpop.permute.xlu0 %1759  ;;  %p2860_p11 = scmp.ne.s32.totalorder %s4263_s16, %s2859_s23  ;;  %p2867_p1 = scmp.lt.s32.totalorder %s2865_s28, %s2859_s23 }
 0x229   : > { %1610 = vrot.lane.b32.xlu1 %v1516_v57, %s2930_s21  ;;  %1848 = vst.msk [vmem:[#allocation3 + $0x40] sm:$0xff] %vm1839_vm9, %v1760_v2 }
 0x22a   : > { %1771 = vrot.lane.b32.xlu0 %v1693_v30, %s2931_s7  ;;  %p2861_p12 = pnand %p2860_p11, %p2987_p5  ;;  %p2868_p2 = por %p2867_p1, %p2866_p0 }
 0x22b   : > { %v1601_v13 = vpop.permute.xlu1 %1600 }
 0x22c   : > { %1672 = vst.msk [vmem:[#allocation3 + $0xc8] sm:$0xff] %vm1646_vm8, %v1601_v13  ;;  %v993_v21 = vpop.permute.xlu0 %992  ;;  %p2862_p13 = pneg %p2861_p12 }
 0x22d   : > { %1612 = vrot.lane.b32.xlu1 %v1517_v15, %s2930_s21  ;;  %1078 = vst.msk [vmem:[#allocation3 + $0x58] sm:$0xff] %vm1066_vm5, %v993_v21 }
 0x22e   : > { %1773 = vrot.lane.b32.xlu0 %v1694_v56, %s2931_s7  ;;  %p2869_p3 = pnand %p2868_p2, %p2862_p13 }
 0x22f   : > { %v1792_v39 = vpop.permute.xlu1 %1791 }
 0x230   : > { %1864 = vst.msk [vmem:[#allocation3 + $0xc0] sm:$0xff] %vm1839_vm9, %v1792_v39  ;;  %v1184_v43 = vpop.permute.xlu0 %1183  ;;  %v1880_v35 = vld [vmem:[#allocation3 + $0x40] sm:$0xff] }
 0x231   : > { %1803 = vrot.lane.b32.xlu1 %v1709_v32, %s2931_s7  ;;  %1270 = vst.msk [vmem:[#allocation3 + $0x50] sm:$0xff] %vm1259_vm6, %v1184_v43  ;;  %2748 = vmatprep.mubr.msk.f32.mxu0 %vm1913_vm10, %v1880_v35 }
 0x233   : > { %v1025_v36 = vpop.permute.xlu1 %1024 }
 0x234   : > { %1094 = vst.msk [vmem:[#allocation3 + $0xd8] sm:$0xff] %vm1066_vm5, %v1025_v36  ;;  %v1762_v46 = vpop.permute.xlu0 %1761 }
 0x235   : > { %1805 = vrot.lane.b32.xlu1 %v1710_v42, %s2931_s7  ;;  %1849 = vst.msk [vmem:[#allocation3 + $0x48] sm:$0xff] %vm1839_vm9, %v1762_v46 }
 0x237   : > { %v1216_v3 = vpop.permute.xlu1 %1215  ;;  %v1896_v5 = vld [vmem:[#allocation3 + $0xc0] sm:$0xff] }
 0x238   : > { %1286 = vst.msk [vmem:[#allocation3 + $0xd0] sm:$0xff] %vm1259_vm6, %v1216_v3  ;;  %2772 = vmatprep.mubr.msk.f32.mxu1 %vm1913_vm10, %v1896_v5  ;;  %v1186_v55 = vpop.permute.xlu0 %1185 }
 0x239   : > { %1271 = vst.msk [vmem:[#allocation3 + $0x58] sm:$0xff] %vm1259_vm6, %v1186_v55  ;;  %v2333_v55 = vld [vmem:[%s3058_s25 + $0x10] sm:$0xff] }
 0x23a   : > { %2365 = vst.msk [vmem:[%s3953_s3 + $0x10] sm:$0xff] %vm142_vm0, %v2333_v55 }
 0x23b   : > { %v1794_v40 = vpop.permute.xlu1 %1793 }
 0x23c   : > { %1865 = vst.msk [vmem:[#allocation3 + $0xc8] sm:$0xff] %vm1839_vm9, %v1794_v40  ;;  %v1378_v59 = vpop.permute.xlu0 %1377  ;;  %v1881_v49 = vld [vmem:[#allocation3 + $0x48] sm:$0xff] }
 0x23d   : > { %1464 = vst.msk [vmem:[#allocation3 + $0x50] sm:$0xff] %vm1453_vm7, %v1378_v59  ;;  %2749 = vmatmul.mubr.msk.f32.gmra.mrb[8].mxu0 %vm1913_vm10, %v1881_v49 }
 0x23f   : > { %v1218_v9 = vpop.permute.xlu1 %1217 }
 0x240   : > { %1287 = vst.msk [vmem:[#allocation3 + $0xd8] sm:$0xff] %vm1259_vm6, %v1218_v9  ;;  %v1380_v16 = vpop.permute.xlu0 %1379 }
 0x241   : > { %1465 = vst.msk [vmem:[#allocation3 + $0x58] sm:$0xff] %vm1453_vm7, %v1380_v16 }
 0x243   : > { %v1410_v4 = vpop.permute.xlu1 %1409  ;;  %v1897_v48 = vld [vmem:[#allocation3 + $0xc8] sm:$0xff] }
 0x244   : > { %1480 = vst.msk [vmem:[#allocation3 + $0xd0] sm:$0xff] %vm1453_vm7, %v1410_v4  ;;  %2773 = vmatmul.mubr.msk.f32.gmra.mrb[8].mxu1 %vm1913_vm10, %v1897_v48  ;;  %v1571_v22 = vpop.permute.xlu0 %1570 }
 0x245   : > { %1657 = vst.msk [vmem:[#allocation3 + $0x50] sm:$0xff] %vm1646_vm8, %v1571_v22  ;;  %v2336_v22 = vld [vmem:[%s3058_s25 + $0x28] sm:$0xff] }
 0x246   : > { %2368 = vst.msk [vmem:[%s3953_s3 + $0x28] sm:$0xff] %vm142_vm0, %v2336_v22 }
 0x247   : > { %v1412_v14 = vpop.permute.xlu1 %1411 }
 0x248   : > { %1481 = vst.msk [vmem:[#allocation3 + $0xd8] sm:$0xff] %vm1453_vm7, %v1412_v14  ;;  %v995_v8 = vpop.permute.xlu0 %994 }
 0x249   : > { %1079 = vst.msk [vmem:[#allocation3 + $0x60] sm:$0xff] %vm1066_vm5, %v995_v8 }
 0x24b   : > { %v1603_v6 = vpop.permute.xlu1 %1602 }
 0x24c   : > { %1673 = vst.msk [vmem:[#allocation3 + $0xd0] sm:$0xff] %vm1646_vm8, %v1603_v6  ;;  %v1573_v54 = vpop.permute.xlu0 %1572 }
 0x24d   : > { %1658 = vst.msk [vmem:[#allocation3 + $0x58] sm:$0xff] %vm1646_vm8, %v1573_v54 }
 0x24f   : > { %v1027_v33 = vpop.permute.xlu1 %1026 }
 0x250   : > { %1095 = vst.msk [vmem:[#allocation3 + $0xe0] sm:$0xff] %vm1066_vm5, %v1027_v33  ;;  %v1764_v53 = vpop.permute.xlu0 %1763 }
 0x251   : > { %1850 = vst.msk [vmem:[#allocation3 + $0x50] sm:$0xff] %vm1839_vm9, %v1764_v53 }
 0x253   : > { %v1605_v51 = vpop.permute.xlu1 %1604 }
 0x254   : > { %1674 = vst.msk [vmem:[#allocation3 + $0xd8] sm:$0xff] %vm1646_vm8, %v1605_v51  ;;  %v997_v47 = vpop.permute.xlu0 %996 }
 0x255   : > { %1080 = vst.msk [vmem:[#allocation3 + $0x68] sm:$0xff] %vm1066_vm5, %v997_v47 }
 0x257   : > { %v1796_v26 = vpop.permute.xlu1 %1795 }
 0x258   : > { %1866 = vst.msk [vmem:[#allocation3 + $0xd0] sm:$0xff] %vm1839_vm9, %v1796_v26  ;;  %v1188_v63 = vpop.permute.xlu0 %1187  ;;  %v1882_v19 = vld [vmem:[#allocation3 + $0x50] sm:$0xff] }
 0x259   : > { %1272 = vst.msk [vmem:[#allocation3 + $0x60] sm:$0xff] %vm1259_vm6, %v1188_v63  ;;  %2751 = vmatprep.mubr.msk.f32.mxu0 %vm1913_vm10, %v1882_v19 }
 0x25b   : > { %v1029_v38 = vpop.permute.xlu1 %1028 }
 0x25c   : > { %1096 = vst.msk [vmem:[#allocation3 + $0xe8] sm:$0xff] %vm1066_vm5, %v1029_v38  ;;  %v1766_v31 = vpop.permute.xlu0 %1765 }
 0x25d   : > { %1851 = vst.msk [vmem:[#allocation3 + $0x58] sm:$0xff] %vm1839_vm9, %v1766_v31 }
 0x25f   : > { %v1220_v45 = vpop.permute.xlu1 %1219  ;;  %v1898_v23 = vld [vmem:[#allocation3 + $0xd0] sm:$0xff] }
 0x260   : > { %1288 = vst.msk [vmem:[#allocation3 + $0xe0] sm:$0xff] %vm1259_vm6, %v1220_v45  ;;  %2775 = vmatprep.mubr.msk.f32.mxu1 %vm1913_vm10, %v1898_v23  ;;  %v1190_v11 = vpop.permute.xlu0 %1189 }
 0x261   : > { %1273 = vst.msk [vmem:[#allocation3 + $0x68] sm:$0xff] %vm1259_vm6, %v1190_v11 }
 0x263   : > { %v1798_v50 = vpop.permute.xlu1 %1797 }
 0x264   : > { %1867 = vst.msk [vmem:[#allocation3 + $0xd8] sm:$0xff] %vm1839_vm9, %v1798_v50  ;;  %v1382_v24 = vpop.permute.xlu0 %1381  ;;  %v1883_v20 = vld [vmem:[#allocation3 + $0x58] sm:$0xff] }
 0x265   : > { %1466 = vst.msk [vmem:[#allocation3 + $0x60] sm:$0xff] %vm1453_vm7, %v1382_v24  ;;  %2752 = vmatmul.mubr.msk.f32.gmra.mrb[10].mxu0 %vm1913_vm10, %v1883_v20  ;;  %v2335_v24 = vld [vmem:[%s3058_s25 + $0x20] sm:$0xff] }
 0x266   : > { %2367 = vst.msk [vmem:[%s3953_s3 + $0x20] sm:$0xff] %vm142_vm0, %v2335_v24  ;;  %v2347_v24 = vld [vmem:[%s3058_s25 + $0x80] sm:$0xff] }
 0x267   : > { %v1222_v17 = vpop.permute.xlu1 %1221  ;;  %2379 = vst.msk [vmem:[%s3953_s3 + $0x80] sm:$0xff] %vm142_vm0, %v2347_v24 }
 0x268   : > { %1289 = vst.msk [vmem:[#allocation3 + $0xe8] sm:$0xff] %vm1259_vm6, %v1222_v17  ;;  %v1384_v60 = vpop.permute.xlu0 %1383  ;;  %v2338_v17 = vld [vmem:[%s3058_s25 + $0x38] sm:$0xff] }
 0x269   : > { %1467 = vst.msk [vmem:[#allocation3 + $0x68] sm:$0xff] %vm1453_vm7, %v1384_v60 }
 0x26a   : > { %2370 = vst.msk [vmem:[%s3953_s3 + $0x38] sm:$0xff] %vm142_vm0, %v2338_v17  ;;  %v2349_v17 = vld [vmem:[%s3058_s25 + $0x90] sm:$0xff] }
 0x26b   : > { %v1414_v58 = vpop.permute.xlu1 %1413  ;;  %v1899_v28 = vld [vmem:[#allocation3 + $0xd8] sm:$0xff]  ;;  %2381 = vst.msk [vmem:[%s3953_s3 + $0x90] sm:$0xff] %vm142_vm0, %v2349_v17 }
 0x26c   : > { %1482 = vst.msk [vmem:[#allocation3 + $0xe0] sm:$0xff] %vm1453_vm7, %v1414_v58  ;;  %2776 = vmatmul.mubr.msk.f32.gmra.mrb[10].mxu1 %vm1913_vm10, %v1899_v28  ;;  %v1575_v61 = vpop.permute.xlu0 %1574 }
 0x26d   : > { %1659 = vst.msk [vmem:[#allocation3 + $0x60] sm:$0xff] %vm1646_vm8, %v1575_v61 }
 0x26f   : > { %v1416_v34 = vpop.permute.xlu1 %1415 }
 0x270   : > { %1483 = vst.msk [vmem:[#allocation3 + $0xe8] sm:$0xff] %vm1453_vm7, %v1416_v34  ;;  %v999_v41 = vpop.permute.xlu0 %998 }
 0x271   : > { %1081 = vst.msk [vmem:[#allocation3 + $0x70] sm:$0xff] %vm1066_vm5, %v999_v41  ;;  %v2337_v41 = vld [vmem:[%s3058_s25 + $0x30] sm:$0xff] }
 0x272   : > { %2369 = vst.msk [vmem:[%s3953_s3 + $0x30] sm:$0xff] %vm142_vm0, %v2337_v41  ;;  %v2351_v41 = vld [vmem:[%s3058_s25 + $0xa0] sm:$0xff] }
 0x273   : > { %v1607_v18 = vpop.permute.xlu1 %1606  ;;  %2383 = vst.msk [vmem:[%s3953_s3 + $0xa0] sm:$0xff] %vm142_vm0, %v2351_v41 }
 0x274   : > { %1675 = vst.msk [vmem:[#allocation3 + $0xe0] sm:$0xff] %vm1646_vm8, %v1607_v18  ;;  %v1577_v25 = vpop.permute.xlu0 %1576  ;;  %v3964_v37 = vpop.f32.mrb[0].mxu1 }
 0x275   : > { %1660 = vst.msk [vmem:[#allocation3 + $0x68] sm:$0xff] %vm1646_vm8, %v1577_v25  ;;  %v3967_v44 = vpop.f32.mrb[1].mxu1 }
 0x277   : > { %v2738_v7 = vpop.f32.mrb[0].mxu0  ;;  %v1031_v0 = vpop.permute.xlu1 %1030 }
 0x278   : > { %vm2236_vm11 = vcmp.ge.f32.partialorder %v2738_v7, 0.0  ;;  %v2268_v52 = vmul.f32 0.01, %v2738_v7  ;;  %1097 = vst.msk [vmem:[#allocation3 + $0xf0] sm:$0xff] %vm1066_vm5, %v1031_v0  ;;  %v2076_v1 = vpop.f32.mrb[1].mxu0  ;;  %v1768_v10 = vpop.permute.xlu0 %1767 }
 0x279   : > { %vm2235_vm12 = vcmp.ge.f32.partialorder %v2076_v1, 0.0  ;;  %v2267_v57 = vmul.f32 0.01, %v2076_v1  ;;  %1852 = vst.msk [vmem:[#allocation3 + $0x60] sm:$0xff] %vm1839_vm9, %v1768_v10 }
 0x27a   : > { %v2300_v27 = vsel %vm2236_vm11, %v2738_v7, %v2268_v52 }
 0x27b   : > { %v1609_v30 = vpop.permute.xlu1 %1608  ;;  %v2299_v2 = vsel %vm2235_vm12, %v2076_v1, %v2267_v57  ;;  %2429 = vrot.lane.b32.xlu1 %v2300_v27, %s2924_s26 }
 0x27c   : > { %1676 = vst.msk [vmem:[#allocation3 + $0xe8] sm:$0xff] %vm1646_vm8, %v1609_v30  ;;  %2427 = vrot.lane.b32.xlu0 %v2299_v2, %s2924_s26  ;;  %v1001_v15 = vpop.permute.xlu0 %1000  ;;  %v2340_v30 = vld [vmem:[%s3058_s25 + $0x48] sm:$0xff]  ;;  %v2339_v2 = vld [vmem:[%s3058_s25 + $0x40] sm:$0xff] }
 0x27d   : > { %1082 = vst.msk [vmem:[#allocation3 + $0x78] sm:$0xff] %vm1066_vm5, %v1001_v15 }
 0x27e   : > { %2372 = vst.msk [vmem:[%s3953_s3 + $0x48] sm:$0xff] %vm142_vm0, %v2340_v30  ;;  %2371 = vst.msk [vmem:[%s3953_s3 + $0x40] sm:$0xff] %vm142_vm0, %v2339_v2 }
 0x27f   : > { %v1800_v13 = vpop.permute.xlu1 %1799 }
 0x280   : > { %1868 = vst.msk [vmem:[#allocation3 + $0xe0] sm:$0xff] %vm1839_vm9, %v1800_v13  ;;  %v1192_v56 = vpop.permute.xlu0 %1191  ;;  %v1884_v21 = vld [vmem:[#allocation3 + $0x60] sm:$0xff] }
 0x281   : > { %1274 = vst.msk [vmem:[#allocation3 + $0x70] sm:$0xff] %vm1259_vm6, %v1192_v56  ;;  %2754 = vmatprep.mubr.msk.f32.mxu0 %vm1913_vm10, %v1884_v21 }
 0x283   : > { %v1033_v32 = vpop.permute.xlu1 %1032 }
 0x284   : > { %1098 = vst.msk [vmem:[#allocation3 + $0xf8] sm:$0xff] %vm1066_vm5, %v1033_v32  ;;  %v1770_v39 = vpop.permute.xlu0 %1769 }
 0x285   : > { %1853 = vst.msk [vmem:[#allocation3 + $0x68] sm:$0xff] %vm1839_vm9, %v1770_v39 }
 0x287   : > { %v1224_v43 = vpop.permute.xlu1 %1223  ;;  %v1900_v35 = vld [vmem:[#allocation3 + $0xe0] sm:$0xff] }
 0x288   : > { %1290 = vst.msk [vmem:[#allocation3 + $0xf0] sm:$0xff] %vm1259_vm6, %v1224_v43  ;;  %2778 = vmatprep.mubr.msk.f32.mxu1 %vm1913_vm10, %v1900_v35  ;;  %v1194_v42 = vpop.permute.xlu0 %1193 }
 0x289   : > { %1275 = vst.msk [vmem:[#allocation3 + $0x78] sm:$0xff] %vm1259_vm6, %v1194_v42 }
 0x28b   : > { %v1802_v36 = vpop.permute.xlu1 %1801 }
 0x28c   : > { %1869 = vst.msk [vmem:[#allocation3 + $0xe8] sm:$0xff] %vm1839_vm9, %v1802_v36  ;;  %v1386_v46 = vpop.permute.xlu0 %1385  ;;  %v1885_v3 = vld [vmem:[#allocation3 + $0x68] sm:$0xff] }
 0x28d   : > { %1468 = vst.msk [vmem:[#allocation3 + $0x70] sm:$0xff] %vm1453_vm7, %v1386_v46  ;;  %2755 = vmatmul.mubr.msk.f32.gmra.mrb[12].mxu0 %vm1913_vm10, %v1885_v3  ;;  %v2342_v46 = vld [vmem:[%s3058_s25 + $0x58] sm:$0xff]  ;;  %v2341_v3 = vld [vmem:[%s3058_s25 + $0x50] sm:$0xff] }
 0x28e   : > { %2374 = vst.msk [vmem:[%s3953_s3 + $0x58] sm:$0xff] %vm142_vm0, %v2342_v46  ;;  %2373 = vst.msk [vmem:[%s3953_s3 + $0x50] sm:$0xff] %vm142_vm0, %v2341_v3  ;;  %v2358_v46 = vld [vmem:[%s3058_s25 + $0xd8] sm:$0xff] }
 0x28f   : > { %v1226_v5 = vpop.permute.xlu1 %1225  ;;  %2390 = vst.msk [vmem:[%s3953_s3 + $0xd8] sm:$0xff] %vm142_vm0, %v2358_v46 }
 0x290   : > { %1291 = vst.msk [vmem:[#allocation3 + $0xf8] sm:$0xff] %vm1259_vm6, %v1226_v5  ;;  %v1388_v40 = vpop.permute.xlu0 %1387  ;;  %v2344_v5 = vld [vmem:[%s3058_s25 + $0x68] sm:$0xff] }
 0x291   : > { %1469 = vst.msk [vmem:[#allocation3 + $0x78] sm:$0xff] %vm1453_vm7, %v1388_v40 }
 0x292   : > { %2376 = vst.msk [vmem:[%s3953_s3 + $0x68] sm:$0xff] %vm142_vm0, %v2344_v5 }
 0x293   : > { %v1418_v59 = vpop.permute.xlu1 %1417  ;;  %v1901_v49 = vld [vmem:[#allocation3 + $0xe8] sm:$0xff] }
 0x294   : > { %1484 = vst.msk [vmem:[#allocation3 + $0xf0] sm:$0xff] %vm1453_vm7, %v1418_v59  ;;  %2779 = vmatmul.mubr.msk.f32.gmra.mrb[12].mxu1 %vm1913_vm10, %v1901_v49  ;;  %v1579_v9 = vpop.permute.xlu0 %1578 }
 0x295   : > { %1661 = vst.msk [vmem:[#allocation3 + $0x70] sm:$0xff] %vm1646_vm8, %v1579_v9 }
 0x297   : > { %v1420_v16 = vpop.permute.xlu1 %1419 }
 0x298   : > { %1485 = vst.msk [vmem:[#allocation3 + $0xf8] sm:$0xff] %vm1453_vm7, %v1420_v16  ;;  %v1581_v4 = vpop.permute.xlu0 %1580  ;;  %v2741_v48 = vpop.f32.mrb[2].mxu0 }
 0x299   : > { %1662 = vst.msk [vmem:[#allocation3 + $0x78] sm:$0xff] %vm1646_vm8, %v1581_v4  ;;  %vm2238_vm13 = vcmp.ge.f32.partialorder %v2741_v48, 0.0  ;;  %v2270_v14 = vmul.f32 0.01, %v2741_v48  ;;  %v2086_v8 = vpop.f32.mrb[3].mxu0 }
 0x29a   : > { %vm2237_vm14 = vcmp.ge.f32.partialorder %v2086_v8, 0.0  ;;  %v2269_v6 = vmul.f32 0.01, %v2086_v8 }
 0x29b   : > { %v1611_v54 = vpop.permute.xlu1 %1610  ;;  %v2302_v33 = vsel %vm2238_vm13, %v2741_v48, %v2270_v14  ;;  %vm2252_vm13 = vcmp.ge.f32.partialorder %v3964_v37, 0.0 }
 0x29c   : > { %1677 = vst.msk [vmem:[#allocation3 + $0xf0] sm:$0xff] %vm1646_vm8, %v1611_v54  ;;  %v1772_v53 = vpop.permute.xlu0 %1771  ;;  %2433 = vrot.lane.b32.xlu1 %v2302_v33, %s2924_s26  ;;  %v2301_v51 = vsel %vm2237_vm14, %v2086_v8, %v2269_v6  ;;  %v2343_v8 = vld [vmem:[%s3058_s25 + $0x60] sm:$0xff]  ;;  %v2346_v6 = vld [vmem:[%s3058_s25 + $0x78] sm:$0xff]  ;;  %vm2251_vm14 = vcmp.ge.f32.partialorder %v3967_v44, 0.0 }
 0x29d   : > { %1854 = vst.msk [vmem:[#allocation3 + $0x70] sm:$0xff] %vm1839_vm9, %v1772_v53  ;;  %2431 = vrot.lane.b32.xlu0 %v2301_v51, %s2924_s26 }
 0x29e   : > { %2375 = vst.msk [vmem:[%s3953_s3 + $0x60] sm:$0xff] %vm142_vm0, %v2343_v8  ;;  %2378 = vst.msk [vmem:[%s3953_s3 + $0x78] sm:$0xff] %vm142_vm0, %v2346_v6 }
 0x29f   : > { %v4003_v47 = vpop.f32.mrb[2].mxu1  ;;  %v1613_v26 = vpop.permute.xlu1 %1612 }
 0x2a0   : > { %1678 = vst.msk [vmem:[#allocation3 + $0xf8] sm:$0xff] %vm1646_vm8, %v1613_v26  ;;  %v4006_v63 = vpop.f32.mrb[3].mxu1  ;;  %v1774_v19 = vpop.permute.xlu0 %1773 }
 0x2a1   : > { %1855 = vst.msk [vmem:[#allocation3 + $0x78] sm:$0xff] %vm1839_vm9, %v1774_v19 }
 0x2a3   : > { %v1804_v38 = vpop.permute.xlu1 %1803 }
 0x2a4   : > { %1870 = vst.msk [vmem:[#allocation3 + $0xf0] sm:$0xff] %vm1839_vm9, %v1804_v38  ;;  %v1886_v31 = vld [vmem:[#allocation3 + $0x70] sm:$0xff] }
 0x2a5   : > { %2757 = vmatprep.mubr.msk.f32.mxu0 %vm1913_vm10, %v1886_v31 }
 0x2a7   : > { %v1806_v45 = vpop.permute.xlu1 %1805 }
 0x2a8   : > { %1871 = vst.msk [vmem:[#allocation3 + $0xf8] sm:$0xff] %vm1839_vm9, %v1806_v45  ;;  %v1887_v23 = vld [vmem:[#allocation3 + $0x78] sm:$0xff] }
 0x2a9   : > { %2758 = vmatmul.mubr.msk.f32.gmra.mrb[14].mxu0 %vm1913_vm10, %v1887_v23 }
 0x2ab   : > { %v1902_v11 = vld [vmem:[#allocation3 + $0xf0] sm:$0xff] }
 0x2ac   : > { %2781 = vmatprep.mubr.msk.f32.mxu1 %vm1913_vm10, %v1902_v11  ;;  %v2345_v11 = vld [vmem:[%s3058_s25 + $0x70] sm:$0xff] }
 0x2ad   : > { %2377 = vst.msk [vmem:[%s3953_s3 + $0x70] sm:$0xff] %vm142_vm0, %v2345_v11 }
 0x2af   : > { %v1903_v50 = vld [vmem:[#allocation3 + $0xf8] sm:$0xff] }
 0x2b0   : > { %2782 = vmatmul.mubr.msk.f32.gmra.mrb[14].mxu1 %vm1913_vm10, %v1903_v50  ;;  %v2348_v50 = vld [vmem:[%s3058_s25 + $0x88] sm:$0xff] }
 0x2b1   : > { %2380 = vst.msk [vmem:[%s3953_s3 + $0x88] sm:$0xff] %vm142_vm0, %v2348_v50 }
 0x2c0   : > { %v2744_v20 = vpop.f32.mrb[4].mxu0 }
 0x2c1   : > { %vm2240_vm15 = vcmp.ge.f32.partialorder %v2744_v20, 0.0  ;;  %v2272_v60 = vmul.f32 0.01, %v2744_v20  ;;  %v2096_v58 = vpop.f32.mrb[5].mxu0 }
 0x2c2   : > { %vm2239_vm1 = vcmp.ge.f32.partialorder %v2096_v58, 0.0  ;;  %v2271_v28 = vmul.f32 0.01, %v2096_v58 }
 0x2c3   : > { %v2304_v61 = vsel %vm2240_vm15, %v2744_v20, %v2272_v60  ;;  %v2350_v20 = vld [vmem:[%s3058_s25 + $0x98] sm:$0xff]  ;;  %vm2254_vm15 = vcmp.ge.f32.partialorder %v4003_v47, 0.0 }
 0x2c4   : > { %2437 = vrot.lane.b32.xlu1 %v2304_v61, %s2924_s26  ;;  %v2303_v62 = vsel %vm2239_vm1, %v2096_v58, %v2271_v28  ;;  %2382 = vst.msk [vmem:[%s3953_s3 + $0x98] sm:$0xff] %vm142_vm0, %v2350_v20  ;;  %v2352_v58 = vld [vmem:[%s3058_s25 + $0xa8] sm:$0xff]  ;;  %vm2253_vm1 = vcmp.ge.f32.partialorder %v4006_v63, 0.0 }
 0x2c5   : > { %2435 = vrot.lane.b32.xlu0 %v2303_v62, %s2924_s26  ;;  %2384 = vst.msk [vmem:[%s3953_s3 + $0xa8] sm:$0xff] %vm142_vm0, %v2352_v58 }
 0x2c7   : > { %v4023_v34 = vpop.f32.mrb[4].mxu1 }
 0x2c8   : > { %v4025_v12 = vpop.f32.mrb[5].mxu1 }
 0x2e8   : > { %v2747_v29 = vpop.f32.mrb[6].mxu0 }
 0x2e9   : > { %vm2242_vm3 = vcmp.ge.f32.partialorder %v2747_v29, 0.0  ;;  %v2274_v18 = vmul.f32 0.01, %v2747_v29  ;;  %v2106_v25 = vpop.f32.mrb[7].mxu0 }
 0x2ea   : > { %vm2241_vm4 = vcmp.ge.f32.partialorder %v2106_v25, 0.0  ;;  %v2273_v7 = vmul.f32 0.01, %v2106_v25 }
 0x2eb   : > { %v2306_v0 = vsel %vm2242_vm3, %v2747_v29, %v2274_v18  ;;  %v2284_v29 = vmul.f32 0.01, %v3964_v37  ;;  %vm2256_vm3 = vcmp.ge.f32.partialorder %v4023_v34, 0.0 }
 0x2ec   : > { %2441 = vrot.lane.b32.xlu1 %v2306_v0, %s2924_s26  ;;  %v2305_v52 = vsel %vm2241_vm4, %v2106_v25, %v2273_v7  ;;  %v2283_v25 = vmul.f32 0.01, %v3967_v44  ;;  %v2354_v0 = vld [vmem:[%s3058_s25 + $0xb8] sm:$0xff]  ;;  %vm2255_vm4 = vcmp.ge.f32.partialorder %v4025_v12, 0.0 }
 0x2ed   : > { %v2430_v1 = vpop.permute.xlu1 %2429  ;;  %2439 = vrot.lane.b32.xlu0 %v2305_v52, %s2924_s26  ;;  %2386 = vst.msk [vmem:[%s3953_s3 + $0xb8] sm:$0xff] %vm142_vm0, %v2354_v0  ;;  %v2316_v30 = vsel %vm2252_vm13, %v3964_v37, %v2284_v29 }
 0x2ee   : > { %v2428_v10 = vpop.permute.xlu0 %2427  ;;  %2524 = vst.msk [vmem:[%s3953_s3 + $0x8] sm:$0xff] %vm487_vm2, %v2430_v1  ;;  %v2353_v1 = vld [vmem:[%s3058_s25 + $0xb0] sm:$0xff] }
 0x2ef   : > { %2523 = vst.msk [vmem:[%s3953_s3] sm:$0xff] %vm487_vm2, %v2428_v10  ;;  %v4036_v57 = vpop.f32.mrb[6].mxu1  ;;  %v2286_v10 = vmul.f32 0.01, %v4003_v47 }
 0x2f0   : > { %v4038_v27 = vpop.f32.mrb[7].mxu1  ;;  %2385 = vst.msk [vmem:[%s3953_s3 + $0xb0] sm:$0xff] %vm142_vm0, %v2353_v1  ;;  %v2290_v3 = vmul.f32 0.01, %v4036_v57 }
 0x30e   : > { %v2434_v15 = vpop.permute.xlu1 %2433 }
 0x30f   : > { %2526 = vst.msk [vmem:[%s3953_s3 + $0x18] sm:$0xff] %vm487_vm2, %v2434_v15  ;;  %v2432_v13 = vpop.permute.xlu0 %2431  ;;  %v2285_v15 = vmul.f32 0.01, %v4006_v63 }
 0x310   : > { %2525 = vst.msk [vmem:[%s3953_s3 + $0x10] sm:$0xff] %vm487_vm2, %v2432_v13  ;;  %v2750_v56 = vpop.f32.mrb[8].mxu0  ;;  %v2315_v13 = vsel %vm2251_vm14, %v3967_v44, %v2283_v25  ;;  %v2318_v44 = vsel %vm2254_vm15, %v4003_v47, %v2286_v10  ;;  %v2357_v47 = vld [vmem:[%s3058_s25 + $0xd0] sm:$0xff] }
 0x311   : > { %vm2244_vm5 = vcmp.ge.f32.partialorder %v2750_v56, 0.0  ;;  %v2276_v21 = vmul.f32 0.01, %v2750_v56  ;;  %v2116_v32 = vpop.f32.mrb[9].mxu0  ;;  %2389 = vst.msk [vmem:[%s3953_s3 + $0xd0] sm:$0xff] %vm142_vm0, %v2357_v47 }
 0x312   : > { %vm2243_vm6 = vcmp.ge.f32.partialorder %v2116_v32, 0.0  ;;  %v2275_v39 = vmul.f32 0.01, %v2116_v32 }
 0x313   : > { %v2308_v43 = vsel %vm2244_vm5, %v2750_v56, %v2276_v21  ;;  %v2356_v56 = vld [vmem:[%s3058_s25 + $0xc8] sm:$0xff]  ;;  %v2355_v21 = vld [vmem:[%s3058_s25 + $0xc0] sm:$0xff]  ;;  %vm2258_vm5 = vcmp.ge.f32.partialorder %v4036_v57, 0.0 }
 0x314   : > { %2445 = vrot.lane.b32.xlu1 %v2308_v43, %s2924_s26  ;;  %v2307_v35 = vsel %vm2243_vm6, %v2116_v32, %v2275_v39  ;;  %2388 = vst.msk [vmem:[%s3953_s3 + $0xc8] sm:$0xff] %vm142_vm0, %v2356_v56  ;;  %v2288_v32 = vmul.f32 0.01, %v4023_v34  ;;  %2387 = vst.msk [vmem:[%s3953_s3 + $0xc0] sm:$0xff] %vm142_vm0, %v2355_v21  ;;  %v2287_v43 = vmul.f32 0.01, %v4025_v12 }
 0x315   : > { %2443 = vrot.lane.b32.xlu0 %v2307_v35, %s2924_s26  ;;  %v2317_v35 = vsel %vm2253_vm1, %v4006_v63, %v2285_v15  ;;  %v2289_v63 = vmul.f32 0.01, %v4038_v27  ;;  %vm2257_vm6 = vcmp.ge.f32.partialorder %v4038_v27, 0.0 }
 0x316   : > { %v2320_v5 = vsel %vm2256_vm3, %v4023_v34, %v2288_v32  ;;  %v2359_v34 = vld [vmem:[%s3058_s25 + $0xe0] sm:$0xff] }
 0x317   : > { %v4052_v42 = vpop.f32.mrb[8].mxu1  ;;  %2391 = vst.msk [vmem:[%s3953_s3 + $0xe0] sm:$0xff] %vm142_vm0, %v2359_v34 }
 0x318   : > { %v4054_v36 = vpop.f32.mrb[9].mxu1 }
 0x336   : > { %v2438_v55 = vpop.permute.xlu1 %2437 }
 0x337   : > { %2528 = vst.msk [vmem:[%s3953_s3 + $0x28] sm:$0xff] %vm487_vm2, %v2438_v55  ;;  %v2436_v40 = vpop.permute.xlu0 %2435  ;;  %v2319_v55 = vsel %vm2255_vm4, %v4025_v12, %v2287_v43  ;;  %v2291_v12 = vmul.f32 0.01, %v4054_v36 }
 0x338   : > { %2527 = vst.msk [vmem:[%s3953_s3 + $0x20] sm:$0xff] %vm487_vm2, %v2436_v40  ;;  %v2753_v59 = vpop.f32.mrb[10].mxu0  ;;  %v2360_v40 = vld [vmem:[%s3058_s25 + $0xe8] sm:$0xff] }
 0x339   : > { %vm2246_vm7 = vcmp.ge.f32.partialorder %v2753_v59, 0.0  ;;  %v2278_v49 = vmul.f32 0.01, %v2753_v59  ;;  %v2126_v9 = vpop.f32.mrb[11].mxu0  ;;  %2392 = vst.msk [vmem:[%s3953_s3 + $0xe8] sm:$0xff] %vm142_vm0, %v2360_v40 }
 0x33a   : > { %vm2245_vm8 = vcmp.ge.f32.partialorder %v2126_v9, 0.0  ;;  %v2277_v16 = vmul.f32 0.01, %v2126_v9 }
 0x33b   : > { %v2310_v4 = vsel %vm2246_vm7, %v2753_v59, %v2278_v49  ;;  %v2292_v59 = vmul.f32 0.01, %v4052_v42  ;;  %v2322_v49 = vsel %vm2258_vm5, %v4036_v57, %v2290_v3  ;;  %vm2260_vm7 = vcmp.ge.f32.partialorder %v4052_v42, 0.0 }
 0x33c   : > { %2449 = vrot.lane.b32.xlu1 %v2310_v4, %s2924_s26  ;;  %v2309_v48 = vsel %vm2245_vm8, %v2126_v9, %v2277_v16  ;;  %v2321_v9 = vsel %vm2257_vm6, %v4038_v27, %v2289_v63  ;;  %v2362_v16 = vld [vmem:[%s3058_s25 + $0xf8] sm:$0xff]  ;;  %vm2259_vm8 = vcmp.ge.f32.partialorder %v4054_v36, 0.0  ;;  %v2361_v4 = vld [vmem:[%s3058_s25 + $0xf0] sm:$0xff]  ;;  %s2676_s25 = sshll.u32 %s2970_s13, 12  ;;  %s4271_s13 = scalar_lea.sflag [#allocation5], %s134_s29 }
 0x33d   : > { %2447 = vrot.lane.b32.xlu0 %v2309_v48, %s2924_s26  ;;  %2394 = vst.msk [vmem:[%s3953_s3 + $0xf8] sm:$0xff] %vm142_vm0, %v2362_v16  ;;  %v2324_v48 = vsel %vm2260_vm7, %v4052_v42, %v2292_v59  ;;  %2393 = vst.msk [vmem:[%s3953_s3 + $0xf0] sm:$0xff] %vm142_vm0, %v2361_v4  ;;  %v2323_v27 = vsel %vm2259_vm8, %v4054_v36, %v2291_v12  ;;  %s4261_s22 = scalar_lea.hbm %s4315_s2, %s2676_s25 }
 0x33f   : > { %v4071_v22 = vpop.f32.mrb[10].mxu1 }
 0x340   : > { %v4073_v14 = vpop.f32.mrb[11].mxu1  ;;  %v2294_v57 = vmul.f32 0.01, %v4071_v22 }
 0x341   : > { %v2293_v8 = vmul.f32 0.01, %v4073_v14 }
 0x35e   : > { %v2442_v54 = vpop.permute.xlu1 %2441 }
 0x35f   : > { %2530 = vst.msk [vmem:[%s3953_s3 + $0x38] sm:$0xff] %vm487_vm2, %v2442_v54  ;;  %v2440_v33 = vpop.permute.xlu0 %2439 }
 0x360   : > { %2529 = vst.msk [vmem:[%s3953_s3 + $0x30] sm:$0xff] %vm487_vm2, %v2440_v33  ;;  %v2756_v53 = vpop.f32.mrb[12].mxu0 }
 0x361   : > { %vm2248_vm9 = vcmp.ge.f32.partialorder %v2756_v53, 0.0  ;;  %v2280_v51 = vmul.f32 0.01, %v2756_v53  ;;  %v2136_v26 = vpop.f32.mrb[13].mxu0 }
 0x362   : > { %vm2247_vm10 = vcmp.ge.f32.partialorder %v2136_v26, 0.0  ;;  %v2279_v19 = vmul.f32 0.01, %v2136_v26 }
 0x363   : > { %v2312_v38 = vsel %vm2248_vm9, %v2756_v53, %v2280_v51  ;;  %vm2262_vm9 = vcmp.ge.f32.partialorder %v4071_v22, 0.0 }
 0x364   : > { %2453 = vrot.lane.b32.xlu1 %v2312_v38, %s2924_s26  ;;  %v2311_v31 = vsel %vm2247_vm10, %v2136_v26, %v2279_v19  ;;  %vm2261_vm10 = vcmp.ge.f32.partialorder %v4073_v14, 0.0  ;;  %v2326_v54 = vsel %vm2262_vm9, %v4071_v22, %v2294_v57 }
 0x365   : > { %2451 = vrot.lane.b32.xlu0 %v2311_v31, %s2924_s26  ;;  %v2325_v33 = vsel %vm2261_vm10, %v4073_v14, %v2293_v8 }
 0x367   : > { %v4087_v45 = vpop.f32.mrb[12].mxu1 }
 0x368   : > { %v4089_v23 = vpop.f32.mrb[13].mxu1  ;;  %v2296_v6 = vmul.f32 0.01, %v4087_v45 }
 0x369   : > { %v2295_v42 = vmul.f32 0.01, %v4089_v23  ;;  %vm2263_vm0 = vcmp.ge.f32.partialorder %v4089_v23, 0.0 }
 0x36b   : > { %v2327_v14 = vsel %vm2263_vm0, %v4089_v23, %v2295_v42 }
 0x37c   : > { %v2759_v60 = vpop.f32.mrb[14].mxu0 }
 0x37d   : > { %vm2250_vm11 = vcmp.ge.f32.partialorder %v2759_v60, 0.0  ;;  %v2282_v28 = vmul.f32 0.01, %v2759_v60  ;;  %v2146_v61 = vpop.f32.mrb[15].mxu0 }
 0x37e   : > { %vm2249_vm12 = vcmp.ge.f32.partialorder %v2146_v61, 0.0  ;;  %v2281_v62 = vmul.f32 0.01, %v2146_v61 }
 0x37f   : > { %v2314_v18 = vsel %vm2250_vm11, %v2759_v60, %v2282_v28  ;;  %vm2264_vm11 = vcmp.ge.f32.partialorder %v4087_v45, 0.0 }
 0x380   : > { %v2313_v7 = vsel %vm2249_vm12, %v2146_v61, %v2281_v62  ;;  %2457 = vrot.lane.b32.xlu1 %v2314_v18, %s2924_s26  ;;  %v2328_v53 = vsel %vm2264_vm11, %v4087_v45, %v2296_v6 }
 0x381   : > { %2455 = vrot.lane.b32.xlu0 %v2313_v7, %s2924_s26 }
 0x383   : > { %v4121_v52 = vpop.f32.mrb[14].mxu1 }
 0x384   : > { %v4126_v2 = vpop.f32.mrb[15].mxu1  ;;  %2461 = vrot.lane.b32.xlu1 %v2316_v30, %s2924_s26  ;;  %v2298_v36 = vmul.f32 0.01, %v4121_v52  ;;  %vm2266_vm12 = vcmp.ge.f32.partialorder %v4121_v52, 0.0 }
 0x385   : > { %2459 = vrot.lane.b32.xlu0 %v2315_v13, %s2924_s26  ;;  %v2297_v22 = vmul.f32 0.01, %v4126_v2  ;;  %vm2265_vm13 = vcmp.ge.f32.partialorder %v4126_v2, 0.0 }
 0x386   : > { %v2446_v37 = vpop.permute.xlu1 %2445  ;;  %v2330_v51 = vsel %vm2266_vm12, %v4121_v52, %v2298_v36 }
 0x387   : > { %2532 = vst.msk [vmem:[%s3953_s3 + $0x48] sm:$0xff] %vm487_vm2, %v2446_v37  ;;  %v2444_v39 = vpop.permute.xlu0 %2443  ;;  %v2329_v26 = vsel %vm2265_vm13, %v4126_v2, %v2297_v22 }
 0x388   : > { %2531 = vst.msk [vmem:[%s3953_s3 + $0x40] sm:$0xff] %vm487_vm2, %v2444_v39  ;;  %2465 = vrot.lane.b32.xlu1 %v2318_v44, %s2924_s26 }
 0x389   : > { %2463 = vrot.lane.b32.xlu0 %v2317_v35, %s2924_s26 }
 0x38c   : > { %2469 = vrot.lane.b32.xlu1 %v2320_v5, %s2924_s26 }
 0x38d   : > { %2467 = vrot.lane.b32.xlu0 %v2319_v55, %s2924_s26 }
 0x390   : > { %2473 = vrot.lane.b32.xlu1 %v2322_v49, %s2924_s26 }
 0x391   : > { %2471 = vrot.lane.b32.xlu0 %v2321_v9, %s2924_s26 }
 0x394   : > { %2477 = vrot.lane.b32.xlu1 %v2324_v48, %s2924_s26 }
 0x395   : > { %2475 = vrot.lane.b32.xlu0 %v2323_v27, %s2924_s26 }
 0x398   : > { %2481 = vrot.lane.b32.xlu1 %v2326_v54, %s2924_s26 }
 0x399   : > { %2479 = vrot.lane.b32.xlu0 %v2325_v33, %s2924_s26 }
 0x39c   : > { %2485 = vrot.lane.b32.xlu1 %v2328_v53, %s2924_s26 }
 0x39d   : > { %2483 = vrot.lane.b32.xlu0 %v2327_v14, %s2924_s26 }
 0x3a0   : > { %2489 = vrot.lane.b32.xlu1 %v2330_v51, %s2924_s26 }
 0x3a1   : > { %2487 = vrot.lane.b32.xlu0 %v2329_v26, %s2924_s26 }
 0x3ae   : > { %v2450_v19 = vpop.permute.xlu1 %2449 }
 0x3af   : > { %2534 = vst.msk [vmem:[%s3953_s3 + $0x58] sm:$0xff] %vm487_vm2, %v2450_v19  ;;  %v2448_v38 = vpop.permute.xlu0 %2447 }
 0x3b0   : > { %2533 = vst.msk [vmem:[%s3953_s3 + $0x50] sm:$0xff] %vm487_vm2, %v2448_v38 }
 0x3d6   : > { %v2454_v31 = vpop.permute.xlu1 %2453 }
 0x3d7   : > { %2536 = vst.msk [vmem:[%s3953_s3 + $0x68] sm:$0xff] %vm487_vm2, %v2454_v31  ;;  %v2452_v45 = vpop.permute.xlu0 %2451 }
 0x3d8   : > { %2535 = vst.msk [vmem:[%s3953_s3 + $0x60] sm:$0xff] %vm487_vm2, %v2452_v45 }
 0x3f2   : > { %v2458_v23 = vpop.permute.xlu1 %2457 }
 0x3f3   : > { %2538 = vst.msk [vmem:[%s3953_s3 + $0x78] sm:$0xff] %vm487_vm2, %v2458_v23  ;;  %v2456_v11 = vpop.permute.xlu0 %2455 }
 0x3f4   : > { %2537 = vst.msk [vmem:[%s3953_s3 + $0x70] sm:$0xff] %vm487_vm2, %v2456_v11 }
 0x3f6   : > { %v2462_v50 = vpop.permute.xlu1 %2461 }
 0x3f7   : > { %2540 = vst.msk [vmem:[%s3953_s3 + $0x88] sm:$0xff] %vm487_vm2, %v2462_v50  ;;  %v2460_v24 = vpop.permute.xlu0 %2459 }
 0x3f8   : > { %2539 = vst.msk [vmem:[%s3953_s3 + $0x80] sm:$0xff] %vm487_vm2, %v2460_v24 }
 0x3fa   : > { %v2466_v20 = vpop.permute.xlu1 %2465 }
 0x3fb   : > { %2542 = vst.msk [vmem:[%s3953_s3 + $0x98] sm:$0xff] %vm487_vm2, %v2466_v20  ;;  %v2464_v17 = vpop.permute.xlu0 %2463 }
 0x3fc   : > { %2541 = vst.msk [vmem:[%s3953_s3 + $0x90] sm:$0xff] %vm487_vm2, %v2464_v17 }
 0x3fe   : > { %v2470_v60 = vpop.permute.xlu1 %2469 }
 0x3ff   : > { %2544 = vst.msk [vmem:[%s3953_s3 + $0xa8] sm:$0xff] %vm487_vm2, %v2470_v60  ;;  %v2468_v58 = vpop.permute.xlu0 %2467 }
 0x400   : > { %2543 = vst.msk [vmem:[%s3953_s3 + $0xa0] sm:$0xff] %vm487_vm2, %v2468_v58 }
 0x402   : > { %v2474_v28 = vpop.permute.xlu1 %2473 }
 0x403   : > { %2546 = vst.msk [vmem:[%s3953_s3 + $0xb8] sm:$0xff] %vm487_vm2, %v2474_v28  ;;  %v2472_v61 = vpop.permute.xlu0 %2471 }
 0x404   : > { %2545 = vst.msk [vmem:[%s3953_s3 + $0xb0] sm:$0xff] %vm487_vm2, %v2472_v61 }
 0x406   : > { %v2478_v62 = vpop.permute.xlu1 %2477 }
 0x407   : > { %2548 = vst.msk [vmem:[%s3953_s3 + $0xc8] sm:$0xff] %vm487_vm2, %v2478_v62  ;;  %v2476_v41 = vpop.permute.xlu0 %2475 }
 0x408   : > { %2547 = vst.msk [vmem:[%s3953_s3 + $0xc0] sm:$0xff] %vm487_vm2, %v2476_v41 }
 0x40a   : > { %v2482_v29 = vpop.permute.xlu1 %2481 }
 0x40b   : > { %2550 = vst.msk [vmem:[%s3953_s3 + $0xd8] sm:$0xff] %vm487_vm2, %v2482_v29  ;;  %v2480_v18 = vpop.permute.xlu0 %2479 }
 0x40c   : > { %2549 = vst.msk [vmem:[%s3953_s3 + $0xd0] sm:$0xff] %vm487_vm2, %v2480_v18 }
 0x40e   : > { %v2486_v25 = vpop.permute.xlu1 %2485 }
 0x40f   : > { %2552 = vst.msk [vmem:[%s3953_s3 + $0xe8] sm:$0xff] %vm487_vm2, %v2486_v25  ;;  %v2484_v7 = vpop.permute.xlu0 %2483 }
 0x410   : > { %2551 = vst.msk [vmem:[%s3953_s3 + $0xe0] sm:$0xff] %vm487_vm2, %v2484_v7 }
 0x412   : > { %v2490_v0 = vpop.permute.xlu1 %2489 }
 0x413   : > { %2554 = vst.msk [vmem:[%s3953_s3 + $0xf8] sm:$0xff] %vm487_vm2, %v2490_v0  ;;  %v2488_v52 = vpop.permute.xlu0 %2487 }
 0x414   : > { %2553 = vst.msk [vmem:[%s3953_s3 + $0xf0] sm:$0xff] %vm487_vm2, %v2488_v52 }
 0x415   : > { %2872 = shalt.err (!%p2869_p3)
}
 0x416   : > { %s2873_s4 = scalar_lea.hbm %s4261_s22, 4096  ;;  %s2877_s7 = scalar_lea.hbm %s4315_s2, 8192 }
 0x417   : > { %p2874_p4 = scmp.ne.s32.totalorder %s4261_s22, %s2873_s4  ;;  %p2878_p9 = scmp.lt.u32.totalorder %s4261_s22, %s4315_s2 }
 0x418   : > { %p2879_p10 = scmp.lt.u32.totalorder %s2877_s7, %s2873_s4  ;;  %p2881_p12 = scmp.lt.u32.totalorder %s2873_s4, %s4261_s22 }
 0x419   : > { %p2875_p7 = pnand %p2874_p4, %p2987_p5 }
 0x41a   : > { %p2880_p11 = por %p2879_p10, %p2878_p9 }
 0x41b   : > { %p2876_p8 = pneg %p2875_p7 }
 0x41c   : > { %p2882_p13 = por %p2881_p12, %p2880_p11 }
 0x41e   : > { %p2883_p0 = pnand %p2882_p13, %p2876_p8 }
 0x420   : > { %2886 = shalt.err (!%p2883_p0)
}
 0x421   : > { %s2933_s29 = smov 128  }
 0x422   : > { %2810 = dma.vmem_to_hbm [thread:$0]  (%p2987_p5), %s4263_s16, 4096, %s4261_s22, %s4271_s13, %s2933_s29, %s2933_s29, %s2924_s26  }
 0x423 PF: > { %p2816_p1 = scmp.ge.s32.totalorder %s2921_s12, 2  ;;  %s2584_s30 = sand.u32 1, %s2909_s9  }
 0x424   : > { %s2585_s3 = scalar_lea.sflag [#allocation5], %s2584_s30 }
 0x425   : > { %p2813_p2 = pnand %p2816_p1, %p2991_p6 }
 0x427   : > { %2904 = dma.done.wait (!%p2813_p2), %s2585_s3, 4096  }
 0x428   : > { %2906 = vsyncadd (!%p2813_p2), %s2585_s3, 4294963200  ;;  %p12_p3 = scmp.ge.s32.totalorder %s2974_s15, 4   ;;  %s4321_s9 = smov %s2913_s10 }
 0x429   : > { %s4322_s10 = smov %s2917_s11  ;;  %s4323_s11 = smov %s2985_s18 }
 0x42a   : > { %s4324_s12 = smov %s2974_s15  ;;  %14 = sbr.rel (!%p12_p3) target bundleno = 3 (0x3), region = 65 }
 0x431   :  { %2590 = vsyncpa [#allocation5], 1 }
 0x432   :  { %2592 = vsyncpa [#allocation5 + $0x1], 1 }

</bundles_post_ra>
